<compile_context>
chip_gen: v6e
topology: v6e:2x2x1
jax: 0.10.0
libtpu: 0.0.40
codegen_flags: <defaults>
</compile_context>

<pallas_src>
import functools
import math

import jax
import jax.numpy as jnp
from jax.experimental import pallas as pl
from jax.experimental.pallas import tpu as pltpu


# ---------------------------------------------------------------------------
# Hardware query helpers
# ---------------------------------------------------------------------------
def _hw_info():
    """Best-effort query: (physical VMEM bytes, # TensorCores per chip)."""
    vmem = 64 * 1024 * 1024  # conservative default (v7x-sized)
    cores = 1
    try:
        vmem = int(pltpu.get_tpu_info().vmem_capacity_bytes)
    except Exception:
        pass
    try:
        kind = jax.devices()[0].device_kind.lower()
        if "v7" in kind:
            cores = 2
    except Exception:
        pass
    return vmem, cores


def _sigmoid_tanh(x):
    # sigmoid(x) = 0.5 * (1 + tanh(x/2)) -- one EUP push instead of exp + reciprocal.
    return 0.5 * (jnp.tanh(0.5 * x) + 1.0)


# ---------------------------------------------------------------------------
# Phase 1: batched input projection (one big MXU matmul, outside the recurrence)
# ---------------------------------------------------------------------------
def _precompute_gates(x, w_ih, batch_first):
    """xg[t] = x_t @ W_ih^T for all timesteps at once (bias is added in-kernel).

    x: (B, T, I) if batch_first else (T, B, I);  w_ih: (4H, I).
    Returns xg: (T, B, 4H) bfloat16 (time-major) -- halves HBM traffic into the kernel.
    """
    spec = "bti,gi->tbg" if batch_first else "tbi,gi->tbg"
    xg = jnp.einsum(
        spec,
        x.astype(jnp.bfloat16),
        w_ih.astype(jnp.bfloat16),
        preferred_element_type=jnp.float32,
    )
    return xg.astype(jnp.bfloat16)


# ---------------------------------------------------------------------------
# Phase 2: recurrent Pallas kernel (chunked over time)
# ---------------------------------------------------------------------------
def _lstm_recurrence_kernel(xg_ref, bias_ref, whh_ref, out_ref, hN_ref, cN_ref,
                            h_sc, c_sc, *, seq_len, masked):
    """Grid = (batch_blocks [parallel], time_chunks [arbitrary]).

    xg_ref : (TC, TB, 4H) precomputed input gates for this time chunk (bf16)
    bias_ref: (1, 4H)     b_ih + b_hh, f32, whole-array VMEM resident
    whh_ref: (H, 4H)      transposed recurrent weight, bf16, whole-array VMEM resident
    out_ref: (TC, TB, H)  per-timestep hidden outputs (bf16 for intermediate layers)
    hN_ref : (TB, H)      final hidden state (f32)
    cN_ref : (TB, H)      final cell state (f32)
    h_sc/c_sc: (TB, H)    f32 VMEM scratch carrying state across time chunks
    """
    tc = xg_ref.shape[0]
    H = h_sc.shape[1]
    c_idx = pl.program_id(1)

    @pl.when(c_idx == 0)
    def _():
        h_sc[...] = jnp.zeros_like(h_sc)
        c_sc[...] = jnp.zeros_like(c_sc)

    bias = bias_ref[...]  # (1, 4H) f32, hoisted once per chunk (tiny)

    def step(i, carry):
        h_prev, c_prev = carry
        # Recurrent matmul only: bf16 operands, f32 accumulation.  whh_ref[...] is a
        # zero-cost view (no hoisted VMEM copy).
        gates = (
            xg_ref[i].astype(jnp.float32)
            + bias
            + jnp.dot(h_prev.astype(jnp.bfloat16), whh_ref[...],
                      preferred_element_type=jnp.float32)
        )  # (TB, 4H)
        # PyTorch gate order: i, f, g, o.
        i_g = _sigmoid_tanh(gates[:, 0 * H:1 * H])
        f_g = _sigmoid_tanh(gates[:, 1 * H:2 * H])
        g_g = jnp.tanh(gates[:, 2 * H:3 * H])
        o_g = _sigmoid_tanh(gates[:, 3 * H:4 * H])
        c_new = f_g * c_prev + i_g * g_g
        h_new = o_g * jnp.tanh(c_new)
        if masked:
            # T was padded up to a multiple of tc; freeze state for padded timesteps.
            keep = (c_idx * tc + i) < seq_len
            c_new = jnp.where(keep, c_new, c_prev)
            h_new = jnp.where(keep, h_new, h_prev)
        out_ref[i] = h_new.astype(out_ref.dtype)
        return h_new, c_new

    unroll = True if tc <= 64 else 8
    h_f, c_f = jax.lax.fori_loop(0, tc, step, (h_sc[...], c_sc[...]), unroll=unroll)
    h_sc[...] = h_f
    c_sc[...] = c_f

    @pl.when(c_idx == pl.num_programs(1) - 1)
    def _():
        hN_ref[...] = h_f.astype(hN_ref.dtype)
        cN_ref[...] = c_f.astype(cN_ref.dtype)


def _layer_vmem_bytes(tc, tb, H, out_itemsize):
    """Approximate VMEM footprint of one layer's pallas_call."""
    whh = 4 * H * H * 2                   # W_hh^T bf16, single resident buffer
    bias = 4 * H * 4                      # (1, 4H) f32 resident
    xg = 2 * tc * tb * 4 * H * 2          # bf16 xg block, double buffered
    out = 2 * tc * tb * H * out_itemsize  # output block, double buffered
    state = 2 * tb * H * 4                # h/c scratch
    finals = 2 * 2 * tb * H * 4           # hN/cN output blocks
    return whh + bias + xg + out + state + finals


def _choose_time_chunk(T, tb, H, out_itemsize, vmem_budget):
    """Largest time chunk <= 64 that fits the VMEM budget; prefer a divisor of T."""
    def fits(tc):
        return _layer_vmem_bytes(tc, tb, H, out_itemsize) <= vmem_budget

    max_tc = 1
    for cand in range(min(64, T), 0, -1):
        if fits(cand):
            max_tc = cand
            break
    divisors = [d for d in range(1, max_tc + 1) if T % d == 0]
    best_div = max(divisors) if divisors else 1
    # Take the divisor (no padding / masking) unless it is much smaller than the best
    # fitting chunk, in which case pad + mask the tail instead.
    if best_div == T or best_div * 2 > max_tc:
        return best_div
    return max_tc


def _run_lstm_layer_recurrence(xg, bias, w_hh, *, out_dtype=jnp.float32,
                               time_chunk=None, batch_block=None):
    """xg: (T, B, 4H) bf16 precomputed gates, bias: (4H,) f32, w_hh: (4H, H).

    Returns (out (T, B, H) out_dtype, h_N (B, H) f32, c_N (B, H) f32).
    """
    T, B, H4 = xg.shape
    H = H4 // 4
    whh_t = w_hh.T.astype(jnp.bfloat16)            # (H, 4H)
    bias2d = bias.reshape(1, H4).astype(jnp.float32)

    phys_vmem, n_cores = _hw_info()
    out_itemsize = 2 if out_dtype == jnp.bfloat16 else 4

    # Batch tiling: split across the two v7x TensorCores when the halves stay
    # sublane-aligned; keep the batch unsplit on single-TC chips (v5e/v6e).
    tb = batch_block
    if tb is None:
        tb = B
        if n_cores >= 2 and B % 2 == 0 and (B // 2) % 8 == 0:
            tb = B // 2
    if B % tb != 0:
        raise ValueError(f"batch_block={tb} must divide batch={B}")

    usable = int(phys_vmem * 0.8)
    tc = time_chunk or _choose_time_chunk(T, tb, H, out_itemsize, usable)

    T_pad = pl.cdiv(T, tc) * tc
    masked = T_pad != T
    if masked:
        xg = jnp.pad(xg, ((0, T_pad - T), (0, 0), (0, 0)))

    grid = (B // tb, T_pad // tc)

    kernel = functools.partial(_lstm_recurrence_kernel, seq_len=T, masked=masked)

    vmem_limit = max(32 * 1024 * 1024,
                     int(_layer_vmem_bytes(tc, tb, H, out_itemsize) * 1.25) + (4 << 20))
    vmem_limit = min(vmem_limit, int(phys_vmem * 0.9))

    grid_spec = pltpu.PrefetchScalarGridSpec(
        num_scalar_prefetch=0,
        grid=grid,
        in_specs=[
            pl.BlockSpec((tc, tb, 4 * H), lambda b, c: (c, b, 0)),
            # bias and W_hh^T: whole-array VMEM resident (single buffer, no re-DMA).
            pl.BlockSpec(memory_space=pltpu.MemorySpace.VMEM),
            pl.BlockSpec(memory_space=pltpu.MemorySpace.VMEM),
        ],
        out_specs=[
            pl.BlockSpec((tc, tb, H), lambda b, c: (c, b, 0)),
            pl.BlockSpec((tb, H), lambda b, c: (b, 0)),
            pl.BlockSpec((tb, H), lambda b, c: (b, 0)),
        ],
        scratch_shapes=[
            pltpu.VMEM((tb, H), jnp.float32),
            pltpu.VMEM((tb, H), jnp.float32),
        ],
    )

    out_tbh, h_N, c_N = pl.pallas_call(
        kernel,
        out_shape=(
            jax.ShapeDtypeStruct((T_pad, B, H), out_dtype),
            jax.ShapeDtypeStruct((B, H), jnp.float32),
            jax.ShapeDtypeStruct((B, H), jnp.float32),
        ),
        grid_spec=grid_spec,
        compiler_params=pltpu.CompilerParams(
            dimension_semantics=("parallel", "arbitrary"),
            vmem_limit_bytes=vmem_limit,
        ),
    )(xg, bias2d, whh_t)

    if masked:
        out_tbh = out_tbh[:T]
    return out_tbh, h_N, c_N


# ---------------------------------------------------------------------------
# Module forward
# ---------------------------------------------------------------------------
def lstm_module_forward(inputs, params, num_layers=1, *, time_chunk=None, batch_block=None):
    """Pallas implementation of LSTMModule.forward with zero initial state.

    inputs: (B, T, input_size), batch_first like nn.LSTM(batch_first=True).
    params: list of (w_ih, w_hh, b_ih, b_hh) per layer.
    Returns (outputs (B, T, H), (final_h (L, B, H), final_c (L, B, H))).
    """
    # TODO(synk): inter-layer dropout (training-mode only, num_layers>1) is not applied.
    layer_in = inputs
    batch_first = True
    h_list, c_list = [], []
    for l in range(num_layers):
        w_ih, w_hh, b_ih, b_hh = params[l]
        xg = _precompute_gates(layer_in, w_ih, batch_first)          # (T, B, 4H) bf16
        bias = (b_ih + b_hh).astype(jnp.float32)
        last = (l == num_layers - 1)
        out_dtype = jnp.float32 if last else jnp.bfloat16            # bf16 intermediates
        out_tbh, h_N, c_N = _run_lstm_layer_recurrence(
            xg, bias, w_hh, out_dtype=out_dtype,
            time_chunk=time_chunk, batch_block=batch_block)
        h_list.append(h_N)
        c_list.append(c_N)
        layer_in = out_tbh          # intermediate layers stay time-major, no transpose
        batch_first = False
    outputs = jnp.transpose(layer_in, (1, 0, 2))  # single (B, T, H) transpose at the end
    return outputs, (jnp.stack(h_list, 0), jnp.stack(c_list, 0))


# ---------------------------------------------------------------------------
# Pure-JAX references for validation
# ---------------------------------------------------------------------------
def _reference_recurrence(xg_bf16, bias, w_hh):
    """lax.scan recurrence mirroring the kernel's precision choices exactly."""
    T, B, H4 = xg_bf16.shape
    H = H4 // 4
    whh_t = w_hh.T.astype(jnp.bfloat16)
    bias = bias.reshape(1, H4).astype(jnp.float32)

    def step(carry, xg_t):
        h, c = carry
        gates = xg_t.astype(jnp.float32) + bias + jnp.dot(
            h.astype(jnp.bfloat16), whh_t, preferred_element_type=jnp.float32)
        i = _sigmoid_tanh(gates[:, 0 * H:1 * H])
        f = _sigmoid_tanh(gates[:, 1 * H:2 * H])
        g = jnp.tanh(gates[:, 2 * H:3 * H])
        o = _sigmoid_tanh(gates[:, 3 * H:4 * H])
        c_new = f * c + i * g
        h_new = o * jnp.tanh(c_new)
        return (h_new, c_new), h_new

    init = (jnp.zeros((B, H), jnp.float32), jnp.zeros((B, H), jnp.float32))
    (hN, cN), out = jax.lax.scan(step, init, xg_bf16)
    return out, hN, cN


def _reference_lstm_matched(inputs, params, num_layers=1):
    layer_in = inputs
    batch_first = True
    h_list, c_list = [], []
    for l in range(num_layers):
        w_ih, w_hh, b_ih, b_hh = params[l]
        xg = _precompute_gates(layer_in, w_ih, batch_first)
        out_tbh, hN, cN = _reference_recurrence(xg, b_ih + b_hh, w_hh)
        h_list.append(hN)
        c_list.append(cN)
        last = (l == num_layers - 1)
        layer_in = out_tbh if last else out_tbh.astype(jnp.bfloat16)
        batch_first = False
    return (jnp.transpose(layer_in, (1, 0, 2)),
            (jnp.stack(h_list, 0), jnp.stack(c_list, 0)))


def _reference_lstm_f32(inputs, params, num_layers=1):
    """Full-f32 nn.LSTM math (loose sanity reference)."""
    layer_in = jnp.transpose(inputs, (1, 0, 2))
    h_list, c_list = [], []
    for l in range(num_layers):
        w_ih, w_hh, b_ih, b_hh = params[l]
        H = w_hh.shape[1]
        B = layer_in.shape[1]

        def step(carry, x_t):
            h, c = carry
            gates = x_t @ w_ih.T + h @ w_hh.T + b_ih + b_hh
            i = jax.nn.sigmoid(gates[:, 0 * H:1 * H])
            f = jax.nn.sigmoid(gates[:, 1 * H:2 * H])
            g = jnp.tanh(gates[:, 2 * H:3 * H])
            o = jax.nn.sigmoid(gates[:, 3 * H:4 * H])
            c_new = f * c + i * g
            h_new = o * jnp.tanh(c_new)
            return (h_new, c_new), h_new

        init = (jnp.zeros((B, H), jnp.float32), jnp.zeros((B, H), jnp.float32))
        (hN, cN), out = jax.lax.scan(step, init, layer_in)
        h_list.append(hN)
        c_list.append(cN)
        layer_in = out
    return (jnp.transpose(layer_in, (1, 0, 2)),
            (jnp.stack(h_list, 0), jnp.stack(c_list, 0)))


def make_params(key, input_size, hidden_size, num_layers):
    """Deterministic init matching nn.LSTM shapes: U(-1/sqrt(H), 1/sqrt(H))."""
    params = []
    k = 1.0 / jnp.sqrt(hidden_size)
    for l in range(num_layers):
        in_sz = input_size if l == 0 else hidden_size
        key, k1, k2, k3, k4 = jax.random.split(key, 5)
        w_ih = jax.random.uniform(k1, (4 * hidden_size, in_sz), jnp.float32, -k, k)
        w_hh = jax.random.uniform(k2, (4 * hidden_size, hidden_size), jnp.float32, -k, k)
        b_ih = jax.random.uniform(k3, (4 * hidden_size,), jnp.float32, -k, k)
        b_hh = jax.random.uniform(k4, (4 * hidden_size,), jnp.float32, -k, k)
        params.append((w_ih, w_hh, b_ih, b_hh))
    return params


if __name__ == "__main__":
    # --- Test 1: single layer, divisor-friendly T (no padding/masking) -----------------
    batch, seq, input_size, hidden_size, num_layers = 2, 8, 16, 32, 1

    key = jax.random.PRNGKey(0)
    key, kx = jax.random.split(key)
    x = jax.random.normal(kx, (batch, seq, input_size), jnp.float32)
    params = make_params(key, input_size, hidden_size, num_layers)

    outputs, (final_h, final_c) = lstm_module_forward(x, params, num_layers)
    jax.block_until_ready((outputs, final_h, final_c))

    assert outputs.shape == (batch, seq, hidden_size)
    assert final_h.shape == (num_layers, batch, hidden_size)
    assert final_c.shape == (num_layers, batch, hidden_size)

    ref_out, (ref_h, ref_c) = _reference_lstm_matched(x, params, num_layers)
    assert jnp.allclose(outputs, ref_out, atol=5e-3, rtol=5e-3)
    assert jnp.allclose(final_h, ref_h, atol=5e-3, rtol=5e-3)
    assert jnp.allclose(final_c, ref_c, atol=5e-3, rtol=5e-3)

    f32_out, (f32_h, f32_c) = _reference_lstm_f32(x, params, num_layers)
    assert jnp.allclose(outputs, f32_out, atol=5e-2, rtol=5e-2)
    assert jnp.allclose(final_h, f32_h, atol=5e-2, rtol=5e-2)
    assert jnp.allclose(final_c, f32_c, atol=5e-2, rtol=5e-2)

    # --- Test 2: two layers, forced non-divisor time_chunk (exercises padding + masking
    # and the bf16 intermediate-layer output path) ---------------------------------------
    batch2, seq2, num_layers2 = 2, 10, 2
    key, kx2 = jax.random.split(key)
    x2 = jax.random.normal(kx2, (batch2, seq2, input_size), jnp.float32)
    params2 = make_params(key, input_size, hidden_size, num_layers2)

    out2, (h2, c2) = lstm_module_forward(x2, params2, num_layers2, time_chunk=4)
    jax.block_until_ready((out2, h2, c2))

    assert out2.shape == (batch2, seq2, hidden_size)
    assert h2.shape == (num_layers2, batch2, hidden_size)
    assert c2.shape == (num_layers2, batch2, hidden_size)

    ref_out2, (ref_h2, ref_c2) = _reference_lstm_matched(x2, params2, num_layers2)
    assert jnp.allclose(out2, ref_out2, atol=5e-3, rtol=5e-3)
    assert jnp.allclose(h2, ref_h2, atol=5e-3, rtol=5e-3)
    assert jnp.allclose(c2, ref_c2, atol=5e-3, rtol=5e-3)

    f32_out2, (f32_h2, f32_c2) = _reference_lstm_f32(x2, params2, num_layers2)
    assert jnp.allclose(out2, f32_out2, atol=1e-1, rtol=1e-1)
    assert jnp.allclose(h2, f32_h2, atol=1e-1, rtol=1e-1)
    assert jnp.allclose(c2, f32_c2, atol=1e-1, rtol=1e-1)

    print("KERNEL_OK")
</pallas_src>

<mosaic_0001>
module attributes {stable_mosaic.version = 11 : i64} {
  func.func @_lstm_recurrence_kernel(%arg0: i32, %arg1: i32, %arg2: memref<8x2x128xbf16, #tpu.memory_space<vmem>>, %arg3: memref<1x128xf32, #tpu.memory_space<vmem>>, %arg4: memref<32x128xbf16, #tpu.memory_space<vmem>>, %arg5: memref<8x2x32xf32, #tpu.memory_space<vmem>>, %arg6: memref<2x32xf32, #tpu.memory_space<vmem>>, %arg7: memref<2x32xf32, #tpu.memory_space<vmem>>, %arg8: memref<2x32xf32, #tpu.memory_space<vmem>>, %arg9: memref<2x32xf32, #tpu.memory_space<vmem>>) attributes {dimension_semantics = [#tpu.dimension_semantics<parallel>, #tpu.dimension_semantics<arbitrary>], iteration_bounds = array<i64: 1, 1>, scalar_prefetch = 0 : i64, scratch_operands = 2 : i64, tpu.core_type = #tpu.core_type<tc>, window_params = [{transform_indices = @transform_0, window_bounds = array<i64: 8, 2, 128>}, {pipeline_mode = #tpu.pipeline_mode<synchronous>, transform_indices = @transform_1, window_bounds = array<i64: 1, 128>}, {pipeline_mode = #tpu.pipeline_mode<synchronous>, transform_indices = @transform_2, window_bounds = array<i64: 32, 128>}, {transform_indices = @transform_3, window_bounds = array<i64: 8, 2, 32>}, {transform_indices = @transform_4, window_bounds = array<i64: 2, 32>}, {transform_indices = @transform_5, window_bounds = array<i64: 2, 32>}]} {
    %c0_i32 = arith.constant 0 : i32
    %0 = arith.cmpi eq, %arg1, %c0_i32 : i32
    %1 = arith.extui %0 : i1 to i32
    %c0_i32_0 = arith.constant 0 : i32
    %2 = arith.cmpi ne, %1, %c0_i32_0 : i32
    scf.if %2 {
      %cst_140 = arith.constant 0.000000e+00 : f32
      %371 = vector.broadcast %cst_140 : f32 to vector<2x32xf32>
      %c0_141 = arith.constant 0 : index
      %c0_142 = arith.constant 0 : index
      %372 = vector.load %arg8[%c0_141, %c0_142] : memref<2x32xf32, #tpu.memory_space<vmem>>, vector<2x32xf32>
      tpu.vector_store %arg8[%c0_141, %c0_142], %371 {strides = array<i32>} : memref<2x32xf32, #tpu.memory_space<vmem>>, vector<2x32xf32>,
      %cst_143 = arith.constant 0.000000e+00 : f32
      %373 = vector.broadcast %cst_143 : f32 to vector<2x32xf32>
      %c0_144 = arith.constant 0 : index
      %c0_145 = arith.constant 0 : index
      %374 = vector.load %arg9[%c0_144, %c0_145] : memref<2x32xf32, #tpu.memory_space<vmem>>, vector<2x32xf32>
      tpu.vector_store %arg9[%c0_144, %c0_145], %373 {strides = array<i32>} : memref<2x32xf32, #tpu.memory_space<vmem>>, vector<2x32xf32>,
    } else {
    }
    %c0 = arith.constant 0 : index
    %c0_1 = arith.constant 0 : index
    %3 = vector.load %arg3[%c0, %c0_1] : memref<1x128xf32, #tpu.memory_space<vmem>>, vector<1x128xf32>
    %c0_2 = arith.constant 0 : index
    %c0_3 = arith.constant 0 : index
    %4 = vector.load %arg8[%c0_2, %c0_3] : memref<2x32xf32, #tpu.memory_space<vmem>>, vector<2x32xf32>
    %c0_4 = arith.constant 0 : index
    %c0_5 = arith.constant 0 : index
    %5 = vector.load %arg9[%c0_4, %c0_5] : memref<2x32xf32, #tpu.memory_space<vmem>>, vector<2x32xf32>
    %c0_i32_6 = arith.constant 0 : i32
    %6 = arith.index_cast %c0_i32_6 : i32 to index
    %c0_7 = arith.constant 0 : index
    %c0_8 = arith.constant 0 : index
    %7 = vector.load %arg2[%6, %c0_7, %c0_8] : memref<8x2x128xbf16, #tpu.memory_space<vmem>>, vector<1x2x128xbf16>
    %8 = vector.shape_cast %7 : vector<1x2x128xbf16> to vector<2x128xbf16>
    %9 = arith.extf %8 : vector<2x128xbf16> to vector<2x128xf32>
    %10 = vector.broadcast %3 : vector<1x128xf32> to vector<2x128xf32>
    %11 = arith.addf %9, %10 : vector<2x128xf32>
    %12 = arith.truncf %4 : vector<2x32xf32> to vector<2x32xbf16>
    %c0_9 = arith.constant 0 : index
    %c0_10 = arith.constant 0 : index
    %13 = vector.load %arg4[%c0_9, %c0_10] : memref<32x128xbf16, #tpu.memory_space<vmem>>, vector<32x128xbf16>
    %cst = arith.constant dense<0.000000e+00> : vector<2x128xf32>
    %14 = tpu.matmul %12, %13, %cst {dimension_numbers = #tpu.dot_dimension_numbers<[1], [0], [0], [1], [0, 0, 1, 1], [], []>} : vector<2x32xbf16>, vector<32x128xbf16>, vector<2x128xf32> -> vector<2x128xf32>
    %15 = arith.addf %11, %14 : vector<2x128xf32>
    %16 = vector.extract_strided_slice %15 {offsets = [0, 0], sizes = [2, 32], strides = [1, 1]} : vector<2x128xf32> to vector<2x32xf32>
    %cst_11 = arith.constant 5.000000e-01 : f32
    %17 = vector.broadcast %cst_11 : f32 to vector<2x32xf32>
    %18 = arith.mulf %17, %16 : vector<2x32xf32>
    %19 = math.tanh %18 : vector<2x32xf32>
    %cst_12 = arith.constant 1.000000e+00 : f32
    %20 = vector.broadcast %cst_12 : f32 to vector<2x32xf32>
    %21 = arith.addf %19, %20 : vector<2x32xf32>
    %cst_13 = arith.constant 5.000000e-01 : f32
    %22 = vector.broadcast %cst_13 : f32 to vector<2x32xf32>
    %23 = arith.mulf %22, %21 : vector<2x32xf32>
    %24 = vector.extract_strided_slice %15 {offsets = [0, 32], sizes = [2, 32], strides = [1, 1]} : vector<2x128xf32> to vector<2x32xf32>
    %cst_14 = arith.constant 5.000000e-01 : f32
    %25 = vector.broadcast %cst_14 : f32 to vector<2x32xf32>
    %26 = arith.mulf %25, %24 : vector<2x32xf32>
    %27 = math.tanh %26 : vector<2x32xf32>
    %cst_15 = arith.constant 1.000000e+00 : f32
    %28 = vector.broadcast %cst_15 : f32 to vector<2x32xf32>
    %29 = arith.addf %27, %28 : vector<2x32xf32>
    %cst_16 = arith.constant 5.000000e-01 : f32
    %30 = vector.broadcast %cst_16 : f32 to vector<2x32xf32>
    %31 = arith.mulf %30, %29 : vector<2x32xf32>
    %32 = vector.extract_strided_slice %15 {offsets = [0, 64], sizes = [2, 32], strides = [1, 1]} : vector<2x128xf32> to vector<2x32xf32>
    %33 = math.tanh %32 : vector<2x32xf32>
    %34 = vector.extract_strided_slice %15 {offsets = [0, 96], sizes = [2, 32], strides = [1, 1]} : vector<2x128xf32> to vector<2x32xf32>
    %cst_17 = arith.constant 5.000000e-01 : f32
    %35 = vector.broadcast %cst_17 : f32 to vector<2x32xf32>
    %36 = arith.mulf %35, %34 : vector<2x32xf32>
    %37 = math.tanh %36 : vector<2x32xf32>
    %cst_18 = arith.constant 1.000000e+00 : f32
    %38 = vector.broadcast %cst_18 : f32 to vector<2x32xf32>
    %39 = arith.addf %37, %38 : vector<2x32xf32>
    %cst_19 = arith.constant 5.000000e-01 : f32
    %40 = vector.broadcast %cst_19 : f32 to vector<2x32xf32>
    %41 = arith.mulf %40, %39 : vector<2x32xf32>
    %42 = arith.mulf %31, %5 : vector<2x32xf32>
    %43 = arith.mulf %23, %33 : vector<2x32xf32>
    %44 = arith.addf %42, %43 : vector<2x32xf32>
    %45 = math.tanh %44 : vector<2x32xf32>
    %46 = arith.mulf %41, %45 : vector<2x32xf32>
    %47 = arith.index_cast %c0_i32_6 : i32 to index
    %c0_20 = arith.constant 0 : index
    %c0_21 = arith.constant 0 : index
    %48 = vector.load %arg5[%47, %c0_20, %c0_21] : memref<8x2x32xf32, #tpu.memory_space<vmem>>, vector<1x2x32xf32>
    %49 = vector.shape_cast %48 : vector<1x2x32xf32> to vector<2x32xf32>
    %50 = vector.shape_cast %46 : vector<2x32xf32> to vector<1x2x32xf32>
    tpu.vector_store %arg5[%47, %c0_20, %c0_21], %50 {strides = array<i32>} : memref<8x2x32xf32, #tpu.memory_space<vmem>>, vector<1x2x32xf32>,
    %c1_i32 = arith.constant 1 : i32
    %51 = arith.index_cast %c1_i32 : i32 to index
    %c0_22 = arith.constant 0 : index
    %c0_23 = arith.constant 0 : index
    %52 = vector.load %arg2[%51, %c0_22, %c0_23] : memref<8x2x128xbf16, #tpu.memory_space<vmem>>, vector<1x2x128xbf16>
    %53 = vector.shape_cast %52 : vector<1x2x128xbf16> to vector<2x128xbf16>
    %54 = arith.extf %53 : vector<2x128xbf16> to vector<2x128xf32>
    %55 = vector.broadcast %3 : vector<1x128xf32> to vector<2x128xf32>
    %56 = arith.addf %54, %55 : vector<2x128xf32>
    %57 = arith.truncf %46 : vector<2x32xf32> to vector<2x32xbf16>
    %c0_24 = arith.constant 0 : index
    %c0_25 = arith.constant 0 : index
    %58 = vector.load %arg4[%c0_24, %c0_25] : memref<32x128xbf16, #tpu.memory_space<vmem>>, vector<32x128xbf16>
    %cst_26 = arith.constant dense<0.000000e+00> : vector<2x128xf32>
    %59 = tpu.matmul %57, %58, %cst_26 {dimension_numbers = #tpu.dot_dimension_numbers<[1], [0], [0], [1], [0, 0, 1, 1], [], []>} : vector<2x32xbf16>, vector<32x128xbf16>, vector<2x128xf32> -> vector<2x128xf32>
    %60 = arith.addf %56, %59 : vector<2x128xf32>
    %61 = vector.extract_strided_slice %60 {offsets = [0, 0], sizes = [2, 32], strides = [1, 1]} : vector<2x128xf32> to vector<2x32xf32>
    %cst_27 = arith.constant 5.000000e-01 : f32
    %62 = vector.broadcast %cst_27 : f32 to vector<2x32xf32>
    %63 = arith.mulf %62, %61 : vector<2x32xf32>
    %64 = math.tanh %63 : vector<2x32xf32>
    %cst_28 = arith.constant 1.000000e+00 : f32
    %65 = vector.broadcast %cst_28 : f32 to vector<2x32xf32>
    %66 = arith.addf %64, %65 : vector<2x32xf32>
    %cst_29 = arith.constant 5.000000e-01 : f32
    %67 = vector.broadcast %cst_29 : f32 to vector<2x32xf32>
    %68 = arith.mulf %67, %66 : vector<2x32xf32>
    %69 = vector.extract_strided_slice %60 {offsets = [0, 32], sizes = [2, 32], strides = [1, 1]} : vector<2x128xf32> to vector<2x32xf32>
    %cst_30 = arith.constant 5.000000e-01 : f32
    %70 = vector.broadcast %cst_30 : f32 to vector<2x32xf32>
    %71 = arith.mulf %70, %69 : vector<2x32xf32>
    %72 = math.tanh %71 : vector<2x32xf32>
    %cst_31 = arith.constant 1.000000e+00 : f32
    %73 = vector.broadcast %cst_31 : f32 to vector<2x32xf32>
    %74 = arith.addf %72, %73 : vector<2x32xf32>
    %cst_32 = arith.constant 5.000000e-01 : f32
    %75 = vector.broadcast %cst_32 : f32 to vector<2x32xf32>
    %76 = arith.mulf %75, %74 : vector<2x32xf32>
    %77 = vector.extract_strided_slice %60 {offsets = [0, 64], sizes = [2, 32], strides = [1, 1]} : vector<2x128xf32> to vector<2x32xf32>
    %78 = math.tanh %77 : vector<2x32xf32>
    %79 = vector.extract_strided_slice %60 {offsets = [0, 96], sizes = [2, 32], strides = [1, 1]} : vector<2x128xf32> to vector<2x32xf32>
    %cst_33 = arith.constant 5.000000e-01 : f32
    %80 = vector.broadcast %cst_33 : f32 to vector<2x32xf32>
    %81 = arith.mulf %80, %79 : vector<2x32xf32>
    %82 = math.tanh %81 : vector<2x32xf32>
    %cst_34 = arith.constant 1.000000e+00 : f32
    %83 = vector.broadcast %cst_34 : f32 to vector<2x32xf32>
    %84 = arith.addf %82, %83 : vector<2x32xf32>
    %cst_35 = arith.constant 5.000000e-01 : f32
    %85 = vector.broadcast %cst_35 : f32 to vector<2x32xf32>
    %86 = arith.mulf %85, %84 : vector<2x32xf32>
    %87 = arith.mulf %76, %44 : vector<2x32xf32>
    %88 = arith.mulf %68, %78 : vector<2x32xf32>
    %89 = arith.addf %87, %88 : vector<2x32xf32>
    %90 = math.tanh %89 : vector<2x32xf32>
    %91 = arith.mulf %86, %90 : vector<2x32xf32>
    %92 = arith.index_cast %c1_i32 : i32 to index
    %c0_36 = arith.constant 0 : index
    %c0_37 = arith.constant 0 : index
    %93 = vector.load %arg5[%92, %c0_36, %c0_37] : memref<8x2x32xf32, #tpu.memory_space<vmem>>, vector<1x2x32xf32>
    %94 = vector.shape_cast %93 : vector<1x2x32xf32> to vector<2x32xf32>
    %95 = vector.shape_cast %91 : vector<2x32xf32> to vector<1x2x32xf32>
    tpu.vector_store %arg5[%92, %c0_36, %c0_37], %95 {strides = array<i32>} : memref<8x2x32xf32, #tpu.memory_space<vmem>>, vector<1x2x32xf32>,
    %c2_i32 = arith.constant 2 : i32
    %96 = arith.index_cast %c2_i32 : i32 to index
    %c0_38 = arith.constant 0 : index
    %c0_39 = arith.constant 0 : index
    %97 = vector.load %arg2[%96, %c0_38, %c0_39] : memref<8x2x128xbf16, #tpu.memory_space<vmem>>, vector<1x2x128xbf16>
    %98 = vector.shape_cast %97 : vector<1x2x128xbf16> to vector<2x128xbf16>
    %99 = arith.extf %98 : vector<2x128xbf16> to vector<2x128xf32>
    %100 = vector.broadcast %3 : vector<1x128xf32> to vector<2x128xf32>
    %101 = arith.addf %99, %100 : vector<2x128xf32>
    %102 = arith.truncf %91 : vector<2x32xf32> to vector<2x32xbf16>
    %c0_40 = arith.constant 0 : index
    %c0_41 = arith.constant 0 : index
    %103 = vector.load %arg4[%c0_40, %c0_41] : memref<32x128xbf16, #tpu.memory_space<vmem>>, vector<32x128xbf16>
    %cst_42 = arith.constant dense<0.000000e+00> : vector<2x128xf32>
    %104 = tpu.matmul %102, %103, %cst_42 {dimension_numbers = #tpu.dot_dimension_numbers<[1], [0], [0], [1], [0, 0, 1, 1], [], []>} : vector<2x32xbf16>, vector<32x128xbf16>, vector<2x128xf32> -> vector<2x128xf32>
    %105 = arith.addf %101, %104 : vector<2x128xf32>
    %106 = vector.extract_strided_slice %105 {offsets = [0, 0], sizes = [2, 32], strides = [1, 1]} : vector<2x128xf32> to vector<2x32xf32>
    %cst_43 = arith.constant 5.000000e-01 : f32
    %107 = vector.broadcast %cst_43 : f32 to vector<2x32xf32>
    %108 = arith.mulf %107, %106 : vector<2x32xf32>
    %109 = math.tanh %108 : vector<2x32xf32>
    %cst_44 = arith.constant 1.000000e+00 : f32
    %110 = vector.broadcast %cst_44 : f32 to vector<2x32xf32>
    %111 = arith.addf %109, %110 : vector<2x32xf32>
    %cst_45 = arith.constant 5.000000e-01 : f32
    %112 = vector.broadcast %cst_45 : f32 to vector<2x32xf32>
    %113 = arith.mulf %112, %111 : vector<2x32xf32>
    %114 = vector.extract_strided_slice %105 {offsets = [0, 32], sizes = [2, 32], strides = [1, 1]} : vector<2x128xf32> to vector<2x32xf32>
    %cst_46 = arith.constant 5.000000e-01 : f32
    %115 = vector.broadcast %cst_46 : f32 to vector<2x32xf32>
    %116 = arith.mulf %115, %114 : vector<2x32xf32>
    %117 = math.tanh %116 : vector<2x32xf32>
    %cst_47 = arith.constant 1.000000e+00 : f32
    %118 = vector.broadcast %cst_47 : f32 to vector<2x32xf32>
    %119 = arith.addf %117, %118 : vector<2x32xf32>
    %cst_48 = arith.constant 5.000000e-01 : f32
    %120 = vector.broadcast %cst_48 : f32 to vector<2x32xf32>
    %121 = arith.mulf %120, %119 : vector<2x32xf32>
    %122 = vector.extract_strided_slice %105 {offsets = [0, 64], sizes = [2, 32], strides = [1, 1]} : vector<2x128xf32> to vector<2x32xf32>
    %123 = math.tanh %122 : vector<2x32xf32>
    %124 = vector.extract_strided_slice %105 {offsets = [0, 96], sizes = [2, 32], strides = [1, 1]} : vector<2x128xf32> to vector<2x32xf32>
    %cst_49 = arith.constant 5.000000e-01 : f32
    %125 = vector.broadcast %cst_49 : f32 to vector<2x32xf32>
    %126 = arith.mulf %125, %124 : vector<2x32xf32>
    %127 = math.tanh %126 : vector<2x32xf32>
    %cst_50 = arith.constant 1.000000e+00 : f32
    %128 = vector.broadcast %cst_50 : f32 to vector<2x32xf32>
    %129 = arith.addf %127, %128 : vector<2x32xf32>
    %cst_51 = arith.constant 5.000000e-01 : f32
    %130 = vector.broadcast %cst_51 : f32 to vector<2x32xf32>
    %131 = arith.mulf %130, %129 : vector<2x32xf32>
    %132 = arith.mulf %121, %89 : vector<2x32xf32>
    %133 = arith.mulf %113, %123 : vector<2x32xf32>
    %134 = arith.addf %132, %133 : vector<2x32xf32>
    %135 = math.tanh %134 : vector<2x32xf32>
    %136 = arith.mulf %131, %135 : vector<2x32xf32>
    %137 = arith.index_cast %c2_i32 : i32 to index
    %c0_52 = arith.constant 0 : index
    %c0_53 = arith.constant 0 : index
    %138 = vector.load %arg5[%137, %c0_52, %c0_53] : memref<8x2x32xf32, #tpu.memory_space<vmem>>, vector<1x2x32xf32>
    %139 = vector.shape_cast %138 : vector<1x2x32xf32> to vector<2x32xf32>
    %140 = vector.shape_cast %136 : vector<2x32xf32> to vector<1x2x32xf32>
    tpu.vector_store %arg5[%137, %c0_52, %c0_53], %140 {strides = array<i32>} : memref<8x2x32xf32, #tpu.memory_space<vmem>>, vector<1x2x32xf32>,
    %c3_i32 = arith.constant 3 : i32
    %141 = arith.index_cast %c3_i32 : i32 to index
    %c0_54 = arith.constant 0 : index
    %c0_55 = arith.constant 0 : index
    %142 = vector.load %arg2[%141, %c0_54, %c0_55] : memref<8x2x128xbf16, #tpu.memory_space<vmem>>, vector<1x2x128xbf16>
    %143 = vector.shape_cast %142 : vector<1x2x128xbf16> to vector<2x128xbf16>
    %144 = arith.extf %143 : vector<2x128xbf16> to vector<2x128xf32>
    %145 = vector.broadcast %3 : vector<1x128xf32> to vector<2x128xf32>
    %146 = arith.addf %144, %145 : vector<2x128xf32>
    %147 = arith.truncf %136 : vector<2x32xf32> to vector<2x32xbf16>
    %c0_56 = arith.constant 0 : index
    %c0_57 = arith.constant 0 : index
    %148 = vector.load %arg4[%c0_56, %c0_57] : memref<32x128xbf16, #tpu.memory_space<vmem>>, vector<32x128xbf16>
    %cst_58 = arith.constant dense<0.000000e+00> : vector<2x128xf32>
    %149 = tpu.matmul %147, %148, %cst_58 {dimension_numbers = #tpu.dot_dimension_numbers<[1], [0], [0], [1], [0, 0, 1, 1], [], []>} : vector<2x32xbf16>, vector<32x128xbf16>, vector<2x128xf32> -> vector<2x128xf32>
    %150 = arith.addf %146, %149 : vector<2x128xf32>
    %151 = vector.extract_strided_slice %150 {offsets = [0, 0], sizes = [2, 32], strides = [1, 1]} : vector<2x128xf32> to vector<2x32xf32>
    %cst_59 = arith.constant 5.000000e-01 : f32
    %152 = vector.broadcast %cst_59 : f32 to vector<2x32xf32>
    %153 = arith.mulf %152, %151 : vector<2x32xf32>
    %154 = math.tanh %153 : vector<2x32xf32>
    %cst_60 = arith.constant 1.000000e+00 : f32
    %155 = vector.broadcast %cst_60 : f32 to vector<2x32xf32>
    %156 = arith.addf %154, %155 : vector<2x32xf32>
    %cst_61 = arith.constant 5.000000e-01 : f32
    %157 = vector.broadcast %cst_61 : f32 to vector<2x32xf32>
    %158 = arith.mulf %157, %156 : vector<2x32xf32>
    %159 = vector.extract_strided_slice %150 {offsets = [0, 32], sizes = [2, 32], strides = [1, 1]} : vector<2x128xf32> to vector<2x32xf32>
    %cst_62 = arith.constant 5.000000e-01 : f32
    %160 = vector.broadcast %cst_62 : f32 to vector<2x32xf32>
    %161 = arith.mulf %160, %159 : vector<2x32xf32>
    %162 = math.tanh %161 : vector<2x32xf32>
    %cst_63 = arith.constant 1.000000e+00 : f32
    %163 = vector.broadcast %cst_63 : f32 to vector<2x32xf32>
    %164 = arith.addf %162, %163 : vector<2x32xf32>
    %cst_64 = arith.constant 5.000000e-01 : f32
    %165 = vector.broadcast %cst_64 : f32 to vector<2x32xf32>
    %166 = arith.mulf %165, %164 : vector<2x32xf32>
    %167 = vector.extract_strided_slice %150 {offsets = [0, 64], sizes = [2, 32], strides = [1, 1]} : vector<2x128xf32> to vector<2x32xf32>
    %168 = math.tanh %167 : vector<2x32xf32>
    %169 = vector.extract_strided_slice %150 {offsets = [0, 96], sizes = [2, 32], strides = [1, 1]} : vector<2x128xf32> to vector<2x32xf32>
    %cst_65 = arith.constant 5.000000e-01 : f32
    %170 = vector.broadcast %cst_65 : f32 to vector<2x32xf32>
    %171 = arith.mulf %170, %169 : vector<2x32xf32>
    %172 = math.tanh %171 : vector<2x32xf32>
    %cst_66 = arith.constant 1.000000e+00 : f32
    %173 = vector.broadcast %cst_66 : f32 to vector<2x32xf32>
    %174 = arith.addf %172, %173 : vector<2x32xf32>
    %cst_67 = arith.constant 5.000000e-01 : f32
    %175 = vector.broadcast %cst_67 : f32 to vector<2x32xf32>
    %176 = arith.mulf %175, %174 : vector<2x32xf32>
    %177 = arith.mulf %166, %134 : vector<2x32xf32>
    %178 = arith.mulf %158, %168 : vector<2x32xf32>
    %179 = arith.addf %177, %178 : vector<2x32xf32>
    %180 = math.tanh %179 : vector<2x32xf32>
    %181 = arith.mulf %176, %180 : vector<2x32xf32>
    %182 = arith.index_cast %c3_i32 : i32 to index
    %c0_68 = arith.constant 0 : index
    %c0_69 = arith.constant 0 : index
    %183 = vector.load %arg5[%182, %c0_68, %c0_69] : memref<8x2x32xf32, #tpu.memory_space<vmem>>, vector<1x2x32xf32>
    %184 = vector.shape_cast %183 : vector<1x2x32xf32> to vector<2x32xf32>
    %185 = vector.shape_cast %181 : vector<2x32xf32> to vector<1x2x32xf32>
    tpu.vector_store %arg5[%182, %c0_68, %c0_69], %185 {strides = array<i32>} : memref<8x2x32xf32, #tpu.memory_space<vmem>>, vector<1x2x32xf32>,
    %c4_i32 = arith.constant 4 : i32
    %186 = arith.index_cast %c4_i32 : i32 to index
    %c0_70 = arith.constant 0 : index
    %c0_71 = arith.constant 0 : index
    %187 = vector.load %arg2[%186, %c0_70, %c0_71] : memref<8x2x128xbf16, #tpu.memory_space<vmem>>, vector<1x2x128xbf16>
    %188 = vector.shape_cast %187 : vector<1x2x128xbf16> to vector<2x128xbf16>
    %189 = arith.extf %188 : vector<2x128xbf16> to vector<2x128xf32>
    %190 = vector.broadcast %3 : vector<1x128xf32> to vector<2x128xf32>
    %191 = arith.addf %189, %190 : vector<2x128xf32>
    %192 = arith.truncf %181 : vector<2x32xf32> to vector<2x32xbf16>
    %c0_72 = arith.constant 0 : index
    %c0_73 = arith.constant 0 : index
    %193 = vector.load %arg4[%c0_72, %c0_73] : memref<32x128xbf16, #tpu.memory_space<vmem>>, vector<32x128xbf16>
    %cst_74 = arith.constant dense<0.000000e+00> : vector<2x128xf32>
    %194 = tpu.matmul %192, %193, %cst_74 {dimension_numbers = #tpu.dot_dimension_numbers<[1], [0], [0], [1], [0, 0, 1, 1], [], []>} : vector<2x32xbf16>, vector<32x128xbf16>, vector<2x128xf32> -> vector<2x128xf32>
    %195 = arith.addf %191, %194 : vector<2x128xf32>
    %196 = vector.extract_strided_slice %195 {offsets = [0, 0], sizes = [2, 32], strides = [1, 1]} : vector<2x128xf32> to vector<2x32xf32>
    %cst_75 = arith.constant 5.000000e-01 : f32
    %197 = vector.broadcast %cst_75 : f32 to vector<2x32xf32>
    %198 = arith.mulf %197, %196 : vector<2x32xf32>
    %199 = math.tanh %198 : vector<2x32xf32>
    %cst_76 = arith.constant 1.000000e+00 : f32
    %200 = vector.broadcast %cst_76 : f32 to vector<2x32xf32>
    %201 = arith.addf %199, %200 : vector<2x32xf32>
    %cst_77 = arith.constant 5.000000e-01 : f32
    %202 = vector.broadcast %cst_77 : f32 to vector<2x32xf32>
    %203 = arith.mulf %202, %201 : vector<2x32xf32>
    %204 = vector.extract_strided_slice %195 {offsets = [0, 32], sizes = [2, 32], strides = [1, 1]} : vector<2x128xf32> to vector<2x32xf32>
    %cst_78 = arith.constant 5.000000e-01 : f32
    %205 = vector.broadcast %cst_78 : f32 to vector<2x32xf32>
    %206 = arith.mulf %205, %204 : vector<2x32xf32>
    %207 = math.tanh %206 : vector<2x32xf32>
    %cst_79 = arith.constant 1.000000e+00 : f32
    %208 = vector.broadcast %cst_79 : f32 to vector<2x32xf32>
    %209 = arith.addf %207, %208 : vector<2x32xf32>
    %cst_80 = arith.constant 5.000000e-01 : f32
    %210 = vector.broadcast %cst_80 : f32 to vector<2x32xf32>
    %211 = arith.mulf %210, %209 : vector<2x32xf32>
    %212 = vector.extract_strided_slice %195 {offsets = [0, 64], sizes = [2, 32], strides = [1, 1]} : vector<2x128xf32> to vector<2x32xf32>
    %213 = math.tanh %212 : vector<2x32xf32>
    %214 = vector.extract_strided_slice %195 {offsets = [0, 96], sizes = [2, 32], strides = [1, 1]} : vector<2x128xf32> to vector<2x32xf32>
    %cst_81 = arith.constant 5.000000e-01 : f32
    %215 = vector.broadcast %cst_81 : f32 to vector<2x32xf32>
    %216 = arith.mulf %215, %214 : vector<2x32xf32>
    %217 = math.tanh %216 : vector<2x32xf32>
    %cst_82 = arith.constant 1.000000e+00 : f32
    %218 = vector.broadcast %cst_82 : f32 to vector<2x32xf32>
    %219 = arith.addf %217, %218 : vector<2x32xf32>
    %cst_83 = arith.constant 5.000000e-01 : f32
    %220 = vector.broadcast %cst_83 : f32 to vector<2x32xf32>
    %221 = arith.mulf %220, %219 : vector<2x32xf32>
    %222 = arith.mulf %211, %179 : vector<2x32xf32>
    %223 = arith.mulf %203, %213 : vector<2x32xf32>
    %224 = arith.addf %222, %223 : vector<2x32xf32>
    %225 = math.tanh %224 : vector<2x32xf32>
    %226 = arith.mulf %221, %225 : vector<2x32xf32>
    %227 = arith.index_cast %c4_i32 : i32 to index
    %c0_84 = arith.constant 0 : index
    %c0_85 = arith.constant 0 : index
    %228 = vector.load %arg5[%227, %c0_84, %c0_85] : memref<8x2x32xf32, #tpu.memory_space<vmem>>, vector<1x2x32xf32>
    %229 = vector.shape_cast %228 : vector<1x2x32xf32> to vector<2x32xf32>
    %230 = vector.shape_cast %226 : vector<2x32xf32> to vector<1x2x32xf32>
    tpu.vector_store %arg5[%227, %c0_84, %c0_85], %230 {strides = array<i32>} : memref<8x2x32xf32, #tpu.memory_space<vmem>>, vector<1x2x32xf32>,
    %c5_i32 = arith.constant 5 : i32
    %231 = arith.index_cast %c5_i32 : i32 to index
    %c0_86 = arith.constant 0 : index
    %c0_87 = arith.constant 0 : index
    %232 = vector.load %arg2[%231, %c0_86, %c0_87] : memref<8x2x128xbf16, #tpu.memory_space<vmem>>, vector<1x2x128xbf16>
    %233 = vector.shape_cast %232 : vector<1x2x128xbf16> to vector<2x128xbf16>
    %234 = arith.extf %233 : vector<2x128xbf16> to vector<2x128xf32>
    %235 = vector.broadcast %3 : vector<1x128xf32> to vector<2x128xf32>
    %236 = arith.addf %234, %235 : vector<2x128xf32>
    %237 = arith.truncf %226 : vector<2x32xf32> to vector<2x32xbf16>
    %c0_88 = arith.constant 0 : index
    %c0_89 = arith.constant 0 : index
    %238 = vector.load %arg4[%c0_88, %c0_89] : memref<32x128xbf16, #tpu.memory_space<vmem>>, vector<32x128xbf16>
    %cst_90 = arith.constant dense<0.000000e+00> : vector<2x128xf32>
    %239 = tpu.matmul %237, %238, %cst_90 {dimension_numbers = #tpu.dot_dimension_numbers<[1], [0], [0], [1], [0, 0, 1, 1], [], []>} : vector<2x32xbf16>, vector<32x128xbf16>, vector<2x128xf32> -> vector<2x128xf32>
    %240 = arith.addf %236, %239 : vector<2x128xf32>
    %241 = vector.extract_strided_slice %240 {offsets = [0, 0], sizes = [2, 32], strides = [1, 1]} : vector<2x128xf32> to vector<2x32xf32>
    %cst_91 = arith.constant 5.000000e-01 : f32
    %242 = vector.broadcast %cst_91 : f32 to vector<2x32xf32>
    %243 = arith.mulf %242, %241 : vector<2x32xf32>
    %244 = math.tanh %243 : vector<2x32xf32>
    %cst_92 = arith.constant 1.000000e+00 : f32
    %245 = vector.broadcast %cst_92 : f32 to vector<2x32xf32>
    %246 = arith.addf %244, %245 : vector<2x32xf32>
    %cst_93 = arith.constant 5.000000e-01 : f32
    %247 = vector.broadcast %cst_93 : f32 to vector<2x32xf32>
    %248 = arith.mulf %247, %246 : vector<2x32xf32>
    %249 = vector.extract_strided_slice %240 {offsets = [0, 32], sizes = [2, 32], strides = [1, 1]} : vector<2x128xf32> to vector<2x32xf32>
    %cst_94 = arith.constant 5.000000e-01 : f32
    %250 = vector.broadcast %cst_94 : f32 to vector<2x32xf32>
    %251 = arith.mulf %250, %249 : vector<2x32xf32>
    %252 = math.tanh %251 : vector<2x32xf32>
    %cst_95 = arith.constant 1.000000e+00 : f32
    %253 = vector.broadcast %cst_95 : f32 to vector<2x32xf32>
    %254 = arith.addf %252, %253 : vector<2x32xf32>
    %cst_96 = arith.constant 5.000000e-01 : f32
    %255 = vector.broadcast %cst_96 : f32 to vector<2x32xf32>
    %256 = arith.mulf %255, %254 : vector<2x32xf32>
    %257 = vector.extract_strided_slice %240 {offsets = [0, 64], sizes = [2, 32], strides = [1, 1]} : vector<2x128xf32> to vector<2x32xf32>
    %258 = math.tanh %257 : vector<2x32xf32>
    %259 = vector.extract_strided_slice %240 {offsets = [0, 96], sizes = [2, 32], strides = [1, 1]} : vector<2x128xf32> to vector<2x32xf32>
    %cst_97 = arith.constant 5.000000e-01 : f32
    %260 = vector.broadcast %cst_97 : f32 to vector<2x32xf32>
    %261 = arith.mulf %260, %259 : vector<2x32xf32>
    %262 = math.tanh %261 : vector<2x32xf32>
    %cst_98 = arith.constant 1.000000e+00 : f32
    %263 = vector.broadcast %cst_98 : f32 to vector<2x32xf32>
    %264 = arith.addf %262, %263 : vector<2x32xf32>
    %cst_99 = arith.constant 5.000000e-01 : f32
    %265 = vector.broadcast %cst_99 : f32 to vector<2x32xf32>
    %266 = arith.mulf %265, %264 : vector<2x32xf32>
    %267 = arith.mulf %256, %224 : vector<2x32xf32>
    %268 = arith.mulf %248, %258 : vector<2x32xf32>
    %269 = arith.addf %267, %268 : vector<2x32xf32>
    %270 = math.tanh %269 : vector<2x32xf32>
    %271 = arith.mulf %266, %270 : vector<2x32xf32>
    %272 = arith.index_cast %c5_i32 : i32 to index
    %c0_100 = arith.constant 0 : index
    %c0_101 = arith.constant 0 : index
    %273 = vector.load %arg5[%272, %c0_100, %c0_101] : memref<8x2x32xf32, #tpu.memory_space<vmem>>, vector<1x2x32xf32>
    %274 = vector.shape_cast %273 : vector<1x2x32xf32> to vector<2x32xf32>
    %275 = vector.shape_cast %271 : vector<2x32xf32> to vector<1x2x32xf32>
    tpu.vector_store %arg5[%272, %c0_100, %c0_101], %275 {strides = array<i32>} : memref<8x2x32xf32, #tpu.memory_space<vmem>>, vector<1x2x32xf32>,
    %c6_i32 = arith.constant 6 : i32
    %276 = arith.index_cast %c6_i32 : i32 to index
    %c0_102 = arith.constant 0 : index
    %c0_103 = arith.constant 0 : index
    %277 = vector.load %arg2[%276, %c0_102, %c0_103] : memref<8x2x128xbf16, #tpu.memory_space<vmem>>, vector<1x2x128xbf16>
    %278 = vector.shape_cast %277 : vector<1x2x128xbf16> to vector<2x128xbf16>
    %279 = arith.extf %278 : vector<2x128xbf16> to vector<2x128xf32>
    %280 = vector.broadcast %3 : vector<1x128xf32> to vector<2x128xf32>
    %281 = arith.addf %279, %280 : vector<2x128xf32>
    %282 = arith.truncf %271 : vector<2x32xf32> to vector<2x32xbf16>
    %c0_104 = arith.constant 0 : index
    %c0_105 = arith.constant 0 : index
    %283 = vector.load %arg4[%c0_104, %c0_105] : memref<32x128xbf16, #tpu.memory_space<vmem>>, vector<32x128xbf16>
    %cst_106 = arith.constant dense<0.000000e+00> : vector<2x128xf32>
    %284 = tpu.matmul %282, %283, %cst_106 {dimension_numbers = #tpu.dot_dimension_numbers<[1], [0], [0], [1], [0, 0, 1, 1], [], []>} : vector<2x32xbf16>, vector<32x128xbf16>, vector<2x128xf32> -> vector<2x128xf32>
    %285 = arith.addf %281, %284 : vector<2x128xf32>
    %286 = vector.extract_strided_slice %285 {offsets = [0, 0], sizes = [2, 32], strides = [1, 1]} : vector<2x128xf32> to vector<2x32xf32>
    %cst_107 = arith.constant 5.000000e-01 : f32
    %287 = vector.broadcast %cst_107 : f32 to vector<2x32xf32>
    %288 = arith.mulf %287, %286 : vector<2x32xf32>
    %289 = math.tanh %288 : vector<2x32xf32>
    %cst_108 = arith.constant 1.000000e+00 : f32
    %290 = vector.broadcast %cst_108 : f32 to vector<2x32xf32>
    %291 = arith.addf %289, %290 : vector<2x32xf32>
    %cst_109 = arith.constant 5.000000e-01 : f32
    %292 = vector.broadcast %cst_109 : f32 to vector<2x32xf32>
    %293 = arith.mulf %292, %291 : vector<2x32xf32>
    %294 = vector.extract_strided_slice %285 {offsets = [0, 32], sizes = [2, 32], strides = [1, 1]} : vector<2x128xf32> to vector<2x32xf32>
    %cst_110 = arith.constant 5.000000e-01 : f32
    %295 = vector.broadcast %cst_110 : f32 to vector<2x32xf32>
    %296 = arith.mulf %295, %294 : vector<2x32xf32>
    %297 = math.tanh %296 : vector<2x32xf32>
    %cst_111 = arith.constant 1.000000e+00 : f32
    %298 = vector.broadcast %cst_111 : f32 to vector<2x32xf32>
    %299 = arith.addf %297, %298 : vector<2x32xf32>
    %cst_112 = arith.constant 5.000000e-01 : f32
    %300 = vector.broadcast %cst_112 : f32 to vector<2x32xf32>
    %301 = arith.mulf %300, %299 : vector<2x32xf32>
    %302 = vector.extract_strided_slice %285 {offsets = [0, 64], sizes = [2, 32], strides = [1, 1]} : vector<2x128xf32> to vector<2x32xf32>
    %303 = math.tanh %302 : vector<2x32xf32>
    %304 = vector.extract_strided_slice %285 {offsets = [0, 96], sizes = [2, 32], strides = [1, 1]} : vector<2x128xf32> to vector<2x32xf32>
    %cst_113 = arith.constant 5.000000e-01 : f32
    %305 = vector.broadcast %cst_113 : f32 to vector<2x32xf32>
    %306 = arith.mulf %305, %304 : vector<2x32xf32>
    %307 = math.tanh %306 : vector<2x32xf32>
    %cst_114 = arith.constant 1.000000e+00 : f32
    %308 = vector.broadcast %cst_114 : f32 to vector<2x32xf32>
    %309 = arith.addf %307, %308 : vector<2x32xf32>
    %cst_115 = arith.constant 5.000000e-01 : f32
    %310 = vector.broadcast %cst_115 : f32 to vector<2x32xf32>
    %311 = arith.mulf %310, %309 : vector<2x32xf32>
    %312 = arith.mulf %301, %269 : vector<2x32xf32>
    %313 = arith.mulf %293, %303 : vector<2x32xf32>
    %314 = arith.addf %312, %313 : vector<2x32xf32>
    %315 = math.tanh %314 : vector<2x32xf32>
    %316 = arith.mulf %311, %315 : vector<2x32xf32>
    %317 = arith.index_cast %c6_i32 : i32 to index
    %c0_116 = arith.constant 0 : index
    %c0_117 = arith.constant 0 : index
    %318 = vector.load %arg5[%317, %c0_116, %c0_117] : memref<8x2x32xf32, #tpu.memory_space<vmem>>, vector<1x2x32xf32>
    %319 = vector.shape_cast %318 : vector<1x2x32xf32> to vector<2x32xf32>
    %320 = vector.shape_cast %316 : vector<2x32xf32> to vector<1x2x32xf32>
    tpu.vector_store %arg5[%317, %c0_116, %c0_117], %320 {strides = array<i32>} : memref<8x2x32xf32, #tpu.memory_space<vmem>>, vector<1x2x32xf32>,
    %c7_i32 = arith.constant 7 : i32
    %321 = arith.index_cast %c7_i32 : i32 to index
    %c0_118 = arith.constant 0 : index
    %c0_119 = arith.constant 0 : index
    %322 = vector.load %arg2[%321, %c0_118, %c0_119] : memref<8x2x128xbf16, #tpu.memory_space<vmem>>, vector<1x2x128xbf16>
    %323 = vector.shape_cast %322 : vector<1x2x128xbf16> to vector<2x128xbf16>
    %324 = arith.extf %323 : vector<2x128xbf16> to vector<2x128xf32>
    %325 = vector.broadcast %3 : vector<1x128xf32> to vector<2x128xf32>
    %326 = arith.addf %324, %325 : vector<2x128xf32>
    %327 = arith.truncf %316 : vector<2x32xf32> to vector<2x32xbf16>
    %c0_120 = arith.constant 0 : index
    %c0_121 = arith.constant 0 : index
    %328 = vector.load %arg4[%c0_120, %c0_121] : memref<32x128xbf16, #tpu.memory_space<vmem>>, vector<32x128xbf16>
    %cst_122 = arith.constant dense<0.000000e+00> : vector<2x128xf32>
    %329 = tpu.matmul %327, %328, %cst_122 {dimension_numbers = #tpu.dot_dimension_numbers<[1], [0], [0], [1], [0, 0, 1, 1], [], []>} : vector<2x32xbf16>, vector<32x128xbf16>, vector<2x128xf32> -> vector<2x128xf32>
    %330 = arith.addf %326, %329 : vector<2x128xf32>
    %331 = vector.extract_strided_slice %330 {offsets = [0, 0], sizes = [2, 32], strides = [1, 1]} : vector<2x128xf32> to vector<2x32xf32>
    %cst_123 = arith.constant 5.000000e-01 : f32
    %332 = vector.broadcast %cst_123 : f32 to vector<2x32xf32>
    %333 = arith.mulf %332, %331 : vector<2x32xf32>
    %334 = math.tanh %333 : vector<2x32xf32>
    %cst_124 = arith.constant 1.000000e+00 : f32
    %335 = vector.broadcast %cst_124 : f32 to vector<2x32xf32>
    %336 = arith.addf %334, %335 : vector<2x32xf32>
    %cst_125 = arith.constant 5.000000e-01 : f32
    %337 = vector.broadcast %cst_125 : f32 to vector<2x32xf32>
    %338 = arith.mulf %337, %336 : vector<2x32xf32>
    %339 = vector.extract_strided_slice %330 {offsets = [0, 32], sizes = [2, 32], strides = [1, 1]} : vector<2x128xf32> to vector<2x32xf32>
    %cst_126 = arith.constant 5.000000e-01 : f32
    %340 = vector.broadcast %cst_126 : f32 to vector<2x32xf32>
    %341 = arith.mulf %340, %339 : vector<2x32xf32>
    %342 = math.tanh %341 : vector<2x32xf32>
    %cst_127 = arith.constant 1.000000e+00 : f32
    %343 = vector.broadcast %cst_127 : f32 to vector<2x32xf32>
    %344 = arith.addf %342, %343 : vector<2x32xf32>
    %cst_128 = arith.constant 5.000000e-01 : f32
    %345 = vector.broadcast %cst_128 : f32 to vector<2x32xf32>
    %346 = arith.mulf %345, %344 : vector<2x32xf32>
    %347 = vector.extract_strided_slice %330 {offsets = [0, 64], sizes = [2, 32], strides = [1, 1]} : vector<2x128xf32> to vector<2x32xf32>
    %348 = math.tanh %347 : vector<2x32xf32>
    %349 = vector.extract_strided_slice %330 {offsets = [0, 96], sizes = [2, 32], strides = [1, 1]} : vector<2x128xf32> to vector<2x32xf32>
    %cst_129 = arith.constant 5.000000e-01 : f32
    %350 = vector.broadcast %cst_129 : f32 to vector<2x32xf32>
    %351 = arith.mulf %350, %349 : vector<2x32xf32>
    %352 = math.tanh %351 : vector<2x32xf32>
    %cst_130 = arith.constant 1.000000e+00 : f32
    %353 = vector.broadcast %cst_130 : f32 to vector<2x32xf32>
    %354 = arith.addf %352, %353 : vector<2x32xf32>
    %cst_131 = arith.constant 5.000000e-01 : f32
    %355 = vector.broadcast %cst_131 : f32 to vector<2x32xf32>
    %356 = arith.mulf %355, %354 : vector<2x32xf32>
    %357 = arith.mulf %346, %314 : vector<2x32xf32>
    %358 = arith.mulf %338, %348 : vector<2x32xf32>
    %359 = arith.addf %357, %358 : vector<2x32xf32>
    %360 = math.tanh %359 : vector<2x32xf32>
    %361 = arith.mulf %356, %360 : vector<2x32xf32>
    %362 = arith.index_cast %c7_i32 : i32 to index
    %c0_132 = arith.constant 0 : index
    %c0_133 = arith.constant 0 : index
    %363 = vector.load %arg5[%362, %c0_132, %c0_133] : memref<8x2x32xf32, #tpu.memory_space<vmem>>, vector<1x2x32xf32>
    %364 = vector.shape_cast %363 : vector<1x2x32xf32> to vector<2x32xf32>
    %365 = vector.shape_cast %361 : vector<2x32xf32> to vector<1x2x32xf32>
    tpu.vector_store %arg5[%362, %c0_132, %c0_133], %365 {strides = array<i32>} : memref<8x2x32xf32, #tpu.memory_space<vmem>>, vector<1x2x32xf32>,
    %c8_i32 = arith.constant 8 : i32
    %c0_134 = arith.constant 0 : index
    %c0_135 = arith.constant 0 : index
    %366 = vector.load %arg8[%c0_134, %c0_135] : memref<2x32xf32, #tpu.memory_space<vmem>>, vector<2x32xf32>
    tpu.vector_store %arg8[%c0_134, %c0_135], %361 {strides = array<i32>} : memref<2x32xf32, #tpu.memory_space<vmem>>, vector<2x32xf32>,
    %c0_136 = arith.constant 0 : index
    %c0_137 = arith.constant 0 : index
    %367 = vector.load %arg9[%c0_136, %c0_137] : memref<2x32xf32, #tpu.memory_space<vmem>>, vector<2x32xf32>
    tpu.vector_store %arg9[%c0_136, %c0_137], %359 {strides = array<i32>} : memref<2x32xf32, #tpu.memory_space<vmem>>, vector<2x32xf32>,
    %c0_i32_138 = arith.constant 0 : i32
    %368 = arith.cmpi eq, %arg1, %c0_i32_138 : i32
    %369 = arith.extui %368 : i1 to i32
    %c0_i32_139 = arith.constant 0 : i32
    %370 = arith.cmpi ne, %369, %c0_i32_139 : i32
    scf.if %370 {
      %c0_140 = arith.constant 0 : index
      %c0_141 = arith.constant 0 : index
      %371 = vector.load %arg6[%c0_140, %c0_141] : memref<2x32xf32, #tpu.memory_space<vmem>>, vector<2x32xf32>
      tpu.vector_store %arg6[%c0_140, %c0_141], %361 {strides = array<i32>} : memref<2x32xf32, #tpu.memory_space<vmem>>, vector<2x32xf32>,
      %c0_142 = arith.constant 0 : index
      %c0_143 = arith.constant 0 : index
      %372 = vector.load %arg7[%c0_142, %c0_143] : memref<2x32xf32, #tpu.memory_space<vmem>>, vector<2x32xf32>
      tpu.vector_store %arg7[%c0_142, %c0_143], %359 {strides = array<i32>} : memref<2x32xf32, #tpu.memory_space<vmem>>, vector<2x32xf32>,
    } else {
    }
    return
  }
  func.func @transform_0(%arg0: i32, %arg1: i32) -> (i32, i32, i32) {
    %c0_i32 = arith.constant 0 : i32
    %c0_i32_0 = arith.constant 0 : i32
    return %arg1, %arg0, %c0_i32 : i32, i32, i32
  }
  func.func @transform_1(%arg0: i32, %arg1: i32) -> (i32, i32) {
    %c0_i32 = arith.constant 0 : i32
    %c0_i32_0 = arith.constant 0 : i32
    %c0_i32_1 = arith.constant 0 : i32
    return %c0_i32, %c0_i32_0 : i32, i32
  }
  func.func @transform_2(%arg0: i32, %arg1: i32) -> (i32, i32) {
    %c0_i32 = arith.constant 0 : i32
    %c0_i32_0 = arith.constant 0 : i32
    %c0_i32_1 = arith.constant 0 : i32
    return %c0_i32, %c0_i32_0 : i32, i32
  }
  func.func @transform_3(%arg0: i32, %arg1: i32) -> (i32, i32, i32) {
    %c0_i32 = arith.constant 0 : i32
    %c0_i32_0 = arith.constant 0 : i32
    return %arg1, %arg0, %c0_i32 : i32, i32, i32
  }
  func.func @transform_4(%arg0: i32, %arg1: i32) -> (i32, i32) {
    %c0_i32 = arith.constant 0 : i32
    %c0_i32_0 = arith.constant 0 : i32
    return %arg0, %c0_i32 : i32, i32
  }
  func.func @transform_5(%arg0: i32, %arg1: i32) -> (i32, i32) {
    %c0_i32 = arith.constant 0 : i32
    %c0_i32_0 = arith.constant 0 : i32
    return %arg0, %c0_i32 : i32, i32
  }
}

</mosaic_0001>

<bundles_post_ra>
// kernel: tpu_custom_call.1
= control target key start
LH: loop header
LB: loop body
LE: loop exit
PB: predicated region body
PF: predicated region fallthrough
CT: control target
= control target key end

     0   :  { %11 = vsyncpa [#allocation5], 0  ;;  %s1463_s0 = inlined_call_operand.hbm [shape: bf16[8,2,128], index: 0, kind: input, shape index: {}]   ;;  %s1464_s1 = inlined_call_operand.vmem [shape: f32[1,128], index: 1, kind: input, shape index: {}]   ;;  %s1465_s2 = inlined_call_operand.hbm [shape: bf16[32,128], index: 2, kind: input, shape index: {}]   ;;  %s1466_s3 = inlined_call_operand.hbm [shape: f32[8,2,32], index: 3, kind: output, shape index: {0}]   ;;  %s1467_s4 = inlined_call_operand.hbm [shape: f32[2,32], index: 4, kind: output, shape index: {1}]   ;;  %s1468_s5 = inlined_call_operand.hbm [shape: f32[2,32], index: 5, kind: output, shape index: {2}]  }
   0x1   :  { %12 = vsyncpa [#allocation8], 0 }
   0x2   :  { %13 = vsyncpa [#allocation6], 0 }
   0x3   :  { %14 = vsyncpa [#allocation11], 0  ;;  %s1260_s18 = smov [#allocation4]  }
   0x4   :  { %s20_s19 = sshll.u32 %s1260_s18, 4  ;;  %s21_s19 = int_to_ptr.vmem [resolvable:$true] %s20_s19 }
   0x5   :  { %s1160_s20 = scalar_lea.vmem %s21_s19, 128  ;;  %p1165_p1 = scmp.lt.s32.totalorder %s21_s19, %s21_s19 }
   0x6   :  { %p1161_p0 = scmp.ne.s32.totalorder %s21_s19, %s1160_s20  ;;  %p1166_p2 = scmp.lt.s32.totalorder %s1160_s20, %s1160_s20 }
   0x8   :  { %p1167_p3 = por %p1166_p2, %p1165_p1 }
   0xa   :  { %p1168_p4 = pnand %p1167_p3, %p1161_p0 }
   0xc   :  { %1171 = shalt.err (!%p1168_p4)
}
   0xd   :  { %s1261_s21 = smov 16   ;;  %s1262_s22 = smov 1  }
   0xe   :  { %26 = dma.hbm_to_vmem [thread:$0]  %s1463_s0, 128, %s21_s19, [#allocation5], %s1261_s21, %s1261_s21, %s1262_s22  }
   0xf   :  { %s1263_s25 = smov [#allocation7]  }
  0x10   :  { %s34_s26 = sshll.u32 %s1263_s25, 4  ;;  %s35_s26 = int_to_ptr.vmem [resolvable:$true] %s34_s26 }
  0x11   :  { %s1180_s27 = scalar_lea.vmem %s35_s26, 256  ;;  %p1185_p6 = scmp.lt.s32.totalorder %s35_s26, %s35_s26 }
  0x12   :  { %p1181_p5 = scmp.ne.s32.totalorder %s35_s26, %s1180_s27  ;;  %p1186_p7 = scmp.lt.s32.totalorder %s1180_s27, %s1180_s27 }
  0x14   :  { %p1187_p8 = por %p1186_p7, %p1185_p6 }
  0x16   :  { %p1188_p9 = pnand %p1187_p8, %p1181_p5 }
  0x18   :  { %1191 = shalt.err (!%p1188_p9)
}
  0x19   :  { %s1264_s28 = smov 64   ;;  %s1265_s29 = smov 4  }
  0x1a   :  { %40 = dma.hbm_to_vmem [thread:$0]  %s1465_s2, 256, %s35_s26, [#allocation8], %s1264_s28, %s1264_s28, %s1265_s29  }
  0x1b   :  { %1252 = dma.done.wait [#allocation5], 128  }
  0x1c   :  { %1253 = vsyncadd [#allocation5], 4294967168 }
  0x1d   :  { %1254 = dma.done.wait [#allocation8], 256  }
  0x1e   :  { %1255 = vsyncadd [#allocation8], 4294967040  ;;  %vm52_vm0 = vcmask 254976   ;;  %v1266_v0 = vmov 0.0   ;;  %vm1267_vm1 = vmmov 0   ;;  %v1088_v1 = vld [vmem:[#allocation7 + $0x8] sm:$0xff]  }
  0x1f   :  { %1009 = vmatprep.subr.bf16.mxu0 %v1266_v0  ;;  %1013 = vmatprep.mubr.msk.bf16.mxu0 %vm1267_vm1, %v1266_v0  ;;  %53 = vst.msk [vmem:[#allocation2] sm:$0x3] %vm52_vm0, %v1266_v0  ;;  %54 = vst.msk [vmem:[#allocation3] sm:$0x3] %vm52_vm0, %v1266_v0  ;;  %v1089_v2 = vld [vmem:[#allocation7] sm:$0xff]   ;;  %vm84_vm2 = vcmask 261120  }
  0x20   :  { %1017 = vmatprep.subr.bf16.mxu1 %v1266_v0  ;;  %1021 = vmatprep.mubr.msk.bf16.mxu1 %vm1267_vm1, %v1266_v0  ;;  %v58_v5 = vld [vmem:[#allocation4] sm:$0x1]  ;;  %v1331_v7 = vld [vmem:[%s1464_s1] ss:$0 sm:$0xff]  ;;  %s1268_s7 = smov 32   ;;  %v1090_v26 = vld [vmem:[#allocation7 + $0x8] sm:$0xff]  }
  0x21   :  { %1010 = vmatpush3.bf16.msra.mxu0 %v1088_v1  ;;  %v59_v6 = vunpack.c.l.bf16 %v58_v5  ;;  %1018 = vmatpush3.bf16.msra.mxu1 %v1090_v26  ;;  %v1091_v27 = vld [vmem:[#allocation7] sm:$0xff]   ;;  %v176_v33 = vld [vmem:[#allocation4 + $0x1] sm:$0x1]  ;;  %v1092_v51 = vld [vmem:[#allocation7 + $0x8] sm:$0xff]   ;;  %s1270_s1 = smov 96   ;;  %s1271_s8 = smov [#allocation10]  }
  0x22   :  { %1011 = vmatprep.subr.bf16.mxu0 %v1266_v0  ;;  %1019 = vmatprep.subr.bf16.mxu1 %v1266_v0  ;;  %v177_v34 = vunpack.c.l.bf16 %v176_v33  ;;  %v1093_v52 = vld [vmem:[#allocation7] sm:$0xff]   ;;  %v279_v58 = vld [vmem:[#allocation4 + $0x2] sm:$0x1]  ;;  %s932_s9 = sshll.u32 %s1271_s8, 4  ;;  %s1272_s10 = smov [#allocation9]   ;;  %s933_s9 = int_to_ptr.vmem [resolvable:$true] %s932_s9 }
  0x23   :  { %v66_v8 = vadd.f32 %v1331_v7, %v59_v6  ;;  %v280_v59 = vunpack.c.l.bf16 %v279_v58  ;;  %s919_s11 = sshll.u32 %s1272_s10, 4  ;;  %s1273_s12 = smov [#allocation12]   ;;  %s920_s11 = int_to_ptr.vmem [resolvable:$true] %s919_s11 }
  0x24   :  { %v178_v35 = vadd.f32 %v1331_v7, %v177_v34  ;;  %s942_s13 = sshll.u32 %s1273_s12, 4  ;;  %s1192_s14 = scalar_lea.vmem %s933_s9, 32  ;;  %s943_s13 = int_to_ptr.vmem [resolvable:$true] %s942_s13 }
  0x25   :  { %1012 = vmatpush3.bf16.msra.mxu0 %v1089_v2  ;;  %1020 = vmatpush3.bf16.msra.mxu1 %v1091_v27  ;;  %v281_v60 = vadd.f32 %v1331_v7, %v280_v59  ;;  %p1193_p10 = scmp.ne.s32.totalorder %s933_s9, %s1192_s14  ;;  %p1197_p11 = scmp.lt.s32.totalorder %s933_s9, %s933_s9 }
  0x26   :  { %v56_v3 = vld [vmem:[#allocation2] sm:$0x3]  ;;  %1025 = vmatprep.subr.bf16.mxu0 %v1266_v0  ;;  %v963_v15 = vld.sshfl [vmem:[#allocation3] sm:$0x3 pattern:$0x76325410]  ;;  %1033 = vmatprep.subr.bf16.mxu1 %v1266_v0  ;;  %p1198_p12 = scmp.lt.s32.totalorder %s1192_s14, %s1192_s14 }
  0x27   :  { %v67_v4 = vpack.c.bf16 %v56_v3, %v56_v3 }
  0x28   :  { %p1199_p13 = por %p1198_p12, %p1197_p11 }
  0x29   :  { %1014 = vmatmul.mubr.msk.bf16.vlgmr.msra.gmra.mxu0 %vm84_vm2, %v67_v4 }
  0x2a   :  { %1029 = vmatprep.mubr.msk.bf16.mxu0 %vm1267_vm1, %v1266_v0  ;;  %1026 = vmatpush3.bf16.msra.mxu0 %v1092_v51  ;;  %p1200_p0 = pnand %p1199_p13, %p1193_p10 }
  0x2b   :  { %1027 = vmatprep.subr.bf16.mxu0 %v1266_v0 }
  0x2e   :  { %1028 = vmatpush3.bf16.msra.mxu0 %v1093_v52 }
  0x2f   :  { %1041 = vmatprep.subr.bf16.mxu0 %v1266_v0 }
  0xe9   :  { %v122_v9 = vpop.f32.mrf.mxu0 }
  0xea   :  { %v128_v10 = vadd.f32 %v122_v9, %v66_v8 }
  0xeb   :  { %v1015_v11 = vpop.f32.mrf.mxu0 }
  0xec   :  { %1104 = vtanh.f32 %v128_v10  ;;  %v129_v16 = vmul.f32 0.5, %v128_v10 }
  0xed   :  { %v125_v12 = vpop.f32.mrf.mxu0 }
  0xee   :  { %1106 = vtanh.f32 %v129_v16 }
  0xef   :  { %v1016_v13 = vpop.f32.mrf.mxu0 }
  0xf9   :  { %v1105_v14 = vpop.eup %1104 }
  0xfa   :  { %147 = vrot.lane.b32.xlu0 %v1105_v14, %s1264_s28  ;;  %v1094_v14 = vld [vmem:[#allocation7 + $0x8] sm:$0xff]  }
  0xfb   :  { %v1107_v17 = vpop.eup %1106 }
  0xfc   :  { %v131_v18 = vadd.f32 1.0, %v1107_v17 }
  0xfe   :  { %142 = vrot.lane.b32.xlu0 %v963_v15, %s1268_s7  ;;  %v132_v19 = vmul.f32 0.5, %v131_v18  ;;  %v1095_v15 = vld [vmem:[#allocation7] sm:$0xff]  }
 0x16c   :  { %v148_v20 = vpop.permute.xlu0 %147 }
 0x16d   :  { %v150_v21 = vmul.f32 %v148_v20, %v132_v19 }
 0x16f   :  { %152 = vrot.lane.b32.xlu1 %v150_v21, %s1268_s7  ;;  %v382_v21 = vld [vmem:[#allocation4 + $0x3] sm:$0x1] }
 0x170   :  { %v143_v22 = vpop.permute.xlu0 %142 }
 0x171   :  { %v145_v23 = vmul.f32 %v143_v22, %v132_v19  ;;  %v383_v22 = vunpack.c.l.bf16 %v382_v21 }
 0x1e1   :  { %v153_v24 = vpop.permute.xlu1 %152 }
 0x1e2   :  { %v155_v25 = vadd.f32 %v153_v24, %v145_v23  ;;  %v384_v23 = vadd.f32 %v1331_v7, %v383_v22 }
 0x1e4   :  { %1108 = vtanh.f32 %v155_v25 }
 0x1f1   :  { %v1109_v28 = vpop.eup %1108 }
 0x1f2   :  { %158 = vrot.lane.b32.xlu1 %v1109_v28, %s1264_s28 }
 0x264   :  { %v159_v29 = vpop.permute.xlu1 %158 }
 0x265   :  { %v1340_v30 = vmul.f32 %v159_v29, %v132_v19 }
 0x267   :  { %v179_v31 = vpack.c.bf16 %v1340_v30, %v1340_v30 }
 0x269   :  { %185 = vrot.lane.b32.xlu0 %v179_v31, %s1268_s7 }
 0x2db   :  { %v186_v32 = vpop.permute.xlu0 %185 }
 0x2dc   :  { %1022 = vmatmul.mubr.msk.bf16.vlgmr.msra.gmra.mxu1 %vm84_vm2, %v186_v32 }
 0x2dd   :  { %1037 = vmatprep.mubr.msk.bf16.mxu1 %vm1267_vm1, %v1266_v0  ;;  %1034 = vmatpush3.bf16.msra.mxu1 %v1094_v14 }
 0x2de   :  { %1035 = vmatprep.subr.bf16.mxu1 %v1266_v0 }
 0x2e1   :  { %1036 = vmatpush3.bf16.msra.mxu1 %v1095_v15 }
 0x2e2   :  { %1049 = vmatprep.subr.bf16.mxu1 %v1266_v0 }
 0x39c   :  { %v236_v36 = vpop.f32.mrf.mxu1 }
 0x39d   :  { %v242_v37 = vadd.f32 %v236_v36, %v178_v35 }
 0x39e   :  { %v1023_v38 = vpop.f32.mrf.mxu1 }
 0x39f   :  { %1110 = vtanh.f32 %v242_v37  ;;  %v243_v42 = vmul.f32 0.5, %v242_v37 }
 0x3a0   :  { %v239_v39 = vpop.f32.mrf.mxu1 }
 0x3a1   :  { %1112 = vtanh.f32 %v243_v42 }
 0x3a2   :  { %v1024_v40 = vpop.f32.mrf.mxu1 }
 0x3a3   :  { %v1096_v40 = vld [vmem:[#allocation7 + $0x8] sm:$0xff]  }
 0x3ac   :  { %v1111_v41 = vpop.eup %1110 }
 0x3ad   :  { %250 = vrot.lane.b32.xlu1 %v1111_v41, %s1264_s28  ;;  %v1097_v41 = vld [vmem:[#allocation7] sm:$0xff]  }
 0x3ae   :  { %v1113_v43 = vpop.eup %1112 }
 0x3af   :  { %v245_v44 = vadd.f32 1.0, %v1113_v43 }
 0x3b1   :  { %v246_v45 = vmul.f32 0.5, %v245_v44 }
 0x3b3   :  { %v248_v48 = vmul.f32 %v246_v45, %v155_v25 }
 0x41f   :  { %v251_v46 = vpop.permute.xlu1 %250 }
 0x420   :  { %v253_v47 = vmul.f32 %v251_v46, %v246_v45 }
 0x422   :  { %255 = vrot.lane.b32.xlu0 %v253_v47, %s1268_s7  ;;  %v485_v47 = vld [vmem:[#allocation4 + $0x4] sm:$0x1] }
 0x494   :  { %v256_v49 = vpop.permute.xlu0 %255 }
 0x495   :  { %v258_v50 = vadd.f32 %v256_v49, %v248_v48  ;;  %v486_v48 = vunpack.c.l.bf16 %v485_v47 }
 0x497   :  { %1114 = vtanh.f32 %v258_v50  ;;  %v487_v49 = vadd.f32 %v1331_v7, %v486_v48 }
 0x4a4   :  { %v1115_v53 = vpop.eup %1114 }
 0x4a5   :  { %261 = vrot.lane.b32.xlu1 %v1115_v53, %s1264_s28 }
 0x517   :  { %v262_v54 = vpop.permute.xlu1 %261 }
 0x518   :  { %v1354_v55 = vmul.f32 %v262_v54, %v246_v45 }
 0x51a   :  { %v282_v56 = vpack.c.bf16 %v1354_v55, %v1354_v55 }
 0x51c   :  { %288 = vrot.lane.b32.xlu0 %v282_v56, %s1268_s7 }
 0x58e   :  { %v289_v57 = vpop.permute.xlu0 %288 }
 0x58f   :  { %1030 = vmatmul.mubr.msk.bf16.vlgmr.msra.gmra.mxu0 %vm84_vm2, %v289_v57 }
 0x590   :  { %1045 = vmatprep.mubr.msk.bf16.mxu0 %vm1267_vm1, %v1266_v0  ;;  %1042 = vmatpush3.bf16.msra.mxu0 %v1096_v40 }
 0x591   :  { %1043 = vmatprep.subr.bf16.mxu0 %v1266_v0 }
 0x594   :  { %1044 = vmatpush3.bf16.msra.mxu0 %v1097_v41 }
 0x595   :  { %1057 = vmatprep.subr.bf16.mxu0 %v1266_v0 }
 0x64f   :  { %v339_v61 = vpop.f32.mrf.mxu0 }
 0x650   :  { %v345_v62 = vadd.f32 %v339_v61, %v281_v60 }
 0x651   :  { %v1031_v63 = vpop.f32.mrf.mxu0 }
 0x652   :  { %1116 = vtanh.f32 %v345_v62  ;;  %v346_v4 = vmul.f32 0.5, %v345_v62 }
 0x653   :  { %v342_v1 = vpop.f32.mrf.mxu0 }
 0x654   :  { %1118 = vtanh.f32 %v346_v4  ;;  %v1099_v4 = vld [vmem:[#allocation7] sm:$0xff]  }
 0x655   :  { %v1032_v2 = vpop.f32.mrf.mxu0 }
 0x65f   :  { %v1117_v3 = vpop.eup %1116 }
 0x660   :  { %353 = vrot.lane.b32.xlu1 %v1117_v3, %s1264_s28  ;;  %v1098_v3 = vld [vmem:[#allocation7 + $0x8] sm:$0xff]  }
 0x661   :  { %v1119_v5 = vpop.eup %1118 }
 0x662   :  { %v348_v6 = vadd.f32 1.0, %v1119_v5 }
 0x664   :  { %v349_v8 = vmul.f32 0.5, %v348_v6 }
 0x666   :  { %v351_v11 = vmul.f32 %v349_v8, %v258_v50 }
 0x6d2   :  { %v354_v9 = vpop.permute.xlu1 %353 }
 0x6d3   :  { %v356_v10 = vmul.f32 %v354_v9, %v349_v8 }
 0x6d5   :  { %358 = vrot.lane.b32.xlu0 %v356_v10, %s1268_s7 }
 0x747   :  { %v359_v12 = vpop.permute.xlu0 %358 }
 0x748   :  { %v361_v13 = vadd.f32 %v359_v12, %v351_v11  ;;  %v588_v11 = vld [vmem:[#allocation4 + $0x5] sm:$0x1] }
 0x749   :  { %v589_v12 = vunpack.c.l.bf16 %v588_v11 }
 0x74a   :  { %1120 = vtanh.f32 %v361_v13 }
 0x757   :  { %v1121_v16 = vpop.eup %1120 }
 0x758   :  { %364 = vrot.lane.b32.xlu1 %v1121_v16, %s1264_s28 }
 0x7ca   :  { %v365_v17 = vpop.permute.xlu1 %364 }
 0x7cb   :  { %v1368_v18 = vmul.f32 %v365_v17, %v349_v8 }
 0x7cd   :  { %v385_v19 = vpack.c.bf16 %v1368_v18, %v1368_v18 }
 0x7cf   :  { %391 = vrot.lane.b32.xlu0 %v385_v19, %s1268_s7 }
 0x841   :  { %v392_v20 = vpop.permute.xlu0 %391 }
 0x842   :  { %1038 = vmatmul.mubr.msk.bf16.vlgmr.msra.gmra.mxu1 %vm84_vm2, %v392_v20 }
 0x843   :  { %1053 = vmatprep.mubr.msk.bf16.mxu1 %vm1267_vm1, %v1266_v0  ;;  %1050 = vmatpush3.bf16.msra.mxu1 %v1098_v3 }
 0x844   :  { %1051 = vmatprep.subr.bf16.mxu1 %v1266_v0 }
 0x847   :  { %1052 = vmatpush3.bf16.msra.mxu1 %v1099_v4 }
 0x848   :  { %1065 = vmatprep.subr.bf16.mxu1 %v1266_v0 }
 0x902   :  { %v442_v24 = vpop.f32.mrf.mxu1 }
 0x903   :  { %v448_v25 = vadd.f32 %v442_v24, %v384_v23 }
 0x904   :  { %v1039_v26 = vpop.f32.mrf.mxu1 }
 0x905   :  { %1122 = vtanh.f32 %v448_v25  ;;  %v449_v31 = vmul.f32 0.5, %v448_v25 }
 0x906   :  { %v445_v27 = vpop.f32.mrf.mxu1 }
 0x907   :  { %1124 = vtanh.f32 %v449_v31  ;;  %v1100_v31 = vld [vmem:[#allocation7 + $0x8] sm:$0xff]  }
 0x908   :  { %v1040_v28 = vpop.f32.mrf.mxu1 }
 0x912   :  { %v1123_v29 = vpop.eup %1122 }
 0x913   :  { %456 = vrot.lane.b32.xlu1 %v1123_v29, %s1264_s28 }
 0x914   :  { %v1125_v32 = vpop.eup %1124 }
 0x915   :  { %v451_v33 = vadd.f32 1.0, %v1125_v32  ;;  %v1101_v32 = vld [vmem:[#allocation7] sm:$0xff]  }
 0x917   :  { %v452_v34 = vmul.f32 0.5, %v451_v33 }
 0x919   :  { %v454_v37 = vmul.f32 %v452_v34, %v361_v13  ;;  %v590_v13 = vadd.f32 %v1331_v7, %v589_v12 }
 0x985   :  { %v457_v35 = vpop.permute.xlu1 %456 }
 0x986   :  { %v459_v36 = vmul.f32 %v457_v35, %v452_v34 }
 0x988   :  { %461 = vrot.lane.b32.xlu0 %v459_v36, %s1268_s7 }
 0x9fa   :  { %v462_v38 = vpop.permute.xlu0 %461 }
 0x9fb   :  { %v464_v39 = vadd.f32 %v462_v38, %v454_v37  ;;  %v691_v38 = vld [vmem:[#allocation4 + $0x6] sm:$0x1] }
 0x9fd   :  { %1126 = vtanh.f32 %v464_v39 }
 0xa0a   :  { %v1127_v42 = vpop.eup %1126 }
 0xa0b   :  { %467 = vrot.lane.b32.xlu1 %v1127_v42, %s1264_s28 }
 0xa7d   :  { %v468_v43 = vpop.permute.xlu1 %467 }
 0xa7e   :  { %v1382_v44 = vmul.f32 %v468_v43, %v452_v34 }
 0xa80   :  { %v488_v45 = vpack.c.bf16 %v1382_v44, %v1382_v44 }
 0xa82   :  { %494 = vrot.lane.b32.xlu0 %v488_v45, %s1268_s7 }
 0xaf4   :  { %v495_v46 = vpop.permute.xlu0 %494 }
 0xaf5   :  { %1046 = vmatmul.mubr.msk.bf16.vlgmr.msra.gmra.mxu0 %vm84_vm2, %v495_v46 }
 0xaf6   :  { %1061 = vmatprep.mubr.msk.bf16.mxu0 %vm1267_vm1, %v1266_v0  ;;  %1058 = vmatpush3.bf16.msra.mxu0 %v1100_v31 }
 0xaf7   :  { %1059 = vmatprep.subr.bf16.mxu0 %v1266_v0 }
 0xafa   :  { %1060 = vmatpush3.bf16.msra.mxu0 %v1101_v32 }
 0xbb5   :  { %v545_v50 = vpop.f32.mrf.mxu0 }
 0xbb6   :  { %v551_v51 = vadd.f32 %v545_v50, %v487_v49 }
 0xbb7   :  { %v1047_v52 = vpop.f32.mrf.mxu0 }
 0xbb8   :  { %1128 = vtanh.f32 %v551_v51  ;;  %v552_v57 = vmul.f32 0.5, %v551_v51 }
 0xbb9   :  { %v548_v53 = vpop.f32.mrf.mxu0 }
 0xbba   :  { %1130 = vtanh.f32 %v552_v57 }
 0xbbb   :  { %v1048_v54 = vpop.f32.mrf.mxu0 }
 0xbc5   :  { %v1129_v56 = vpop.eup %1128 }
 0xbc6   :  { %559 = vrot.lane.b32.xlu1 %v1129_v56, %s1264_s28 }
 0xbc7   :  { %v1131_v58 = vpop.eup %1130 }
 0xbc8   :  { %v554_v59 = vadd.f32 1.0, %v1131_v58  ;;  %v1102_v58 = vld [vmem:[#allocation7 + $0x8] sm:$0xff]  }
 0xbca   :  { %v555_v60 = vmul.f32 0.5, %v554_v59  ;;  %v1103_v59 = vld [vmem:[#allocation7] sm:$0xff]  }
 0xbcc   :  { %v557_v63 = vmul.f32 %v555_v60, %v464_v39  ;;  %v692_v39 = vunpack.c.l.bf16 %v691_v38 }
 0xbce   :  { %v693_v40 = vadd.f32 %v1331_v7, %v692_v39 }
 0xc38   :  { %v560_v61 = vpop.permute.xlu1 %559 }
 0xc39   :  { %v562_v62 = vmul.f32 %v560_v61, %v555_v60 }
 0xc3b   :  { %564 = vrot.lane.b32.xlu0 %v562_v62, %s1268_s7 }
 0xcad   :  { %v565_v1 = vpop.permute.xlu0 %564 }
 0xcae   :  { %v567_v2 = vadd.f32 %v565_v1, %v557_v63 }
 0xcb0   :  { %1132 = vtanh.f32 %v567_v2 }
 0xcbd   :  { %v1133_v5 = vpop.eup %1132 }
 0xcbe   :  { %570 = vrot.lane.b32.xlu1 %v1133_v5, %s1264_s28 }
 0xd30   :  { %v571_v6 = vpop.permute.xlu1 %570 }
 0xd31   :  { %v1396_v8 = vmul.f32 %v571_v6, %v555_v60 }
 0xd33   :  { %v591_v9 = vpack.c.bf16 %v1396_v8, %v1396_v8 }
 0xd35   :  { %597 = vrot.lane.b32.xlu0 %v591_v9, %s1268_s7 }
 0xda7   :  { %v598_v10 = vpop.permute.xlu0 %597 }
 0xda8   :  { %1054 = vmatmul.mubr.msk.bf16.vlgmr.msra.gmra.mxu1 %vm84_vm2, %v598_v10 }
 0xda9   :  { %1069 = vmatprep.mubr.msk.bf16.mxu1 %vm1267_vm1, %v1266_v0  ;;  %1066 = vmatpush3.bf16.msra.mxu1 %v1102_v58 }
 0xdaa   :  { %1067 = vmatprep.subr.bf16.mxu1 %v1266_v0 }
 0xdad   :  { %1068 = vmatpush3.bf16.msra.mxu1 %v1103_v59 }
 0xe68   :  { %v648_v14 = vpop.f32.mrf.mxu1 }
 0xe69   :  { %v654_v15 = vadd.f32 %v648_v14, %v590_v13  ;;  %v1269_v14 = vmov 1983009808  }
 0xe6a   :  { %v1055_v16 = vpop.f32.mrf.mxu1 }
 0xe6b   :  { %1134 = vtanh.f32 %v654_v15  ;;  %v655_v21 = vmul.f32 0.5, %v654_v15  ;;  %v164_v15 = vunpack.c.l.s4 %v1269_v14  ;;  %v166_v16 = vlaneseq }
 0xe6c   :  { %v651_v17 = vpop.f32.mrf.mxu1 }
 0xe6d   :  { %1136 = vtanh.f32 %v655_v21 }
 0xe6e   :  { %v1056_v19 = vpop.f32.mrf.mxu1 }
 0xe6f   :  { %v165_v19 = vunpack.c.0.s8 %v164_v15 }
 0xe78   :  { %v1135_v20 = vpop.eup %1134 }
 0xe79   :  { %662 = vrot.lane.b32.xlu1 %v1135_v20, %s1264_s28  ;;  %v167_v20 = vshrl.u32 %v166_v16, 7 }
 0xe7a   :  { %v1137_v22 = vpop.eup %1136 }
 0xe7b   :  { %v657_v23 = vadd.f32 1.0, %v1137_v22 }
 0xe7d   :  { %v658_v24 = vmul.f32 0.5, %v657_v23  ;;  %v168_v23 = vsub.s32 %v165_v19, %v167_v20 }
 0xe7f   :  { %v660_v27 = vmul.f32 %v658_v24, %v567_v2  ;;  %v794_v2 = vld [vmem:[#allocation4 + $0x7] sm:$0x1] }
 0xe80   :  { %v795_v3 = vunpack.c.l.bf16 %v794_v2 }
 0xe82   :  { %v796_v4 = vadd.f32 %v1331_v7, %v795_v3 }
 0xeeb   :  { %v663_v25 = vpop.permute.xlu1 %662 }
 0xeec   :  { %v665_v26 = vmul.f32 %v663_v25, %v658_v24  ;;  %v478_v25 = vrot.slane %v1382_v44, %v168_v23 }
 0xeee   :  { %667 = vrot.lane.b32.xlu0 %v665_v26, %s1268_s7 }
 0xf60   :  { %v668_v28 = vpop.permute.xlu0 %667 }
 0xf61   :  { %v670_v29 = vadd.f32 %v668_v28, %v660_v27 }
 0xf63   :  { %1138 = vtanh.f32 %v670_v29 }
 0xf70   :  { %v1139_v33 = vpop.eup %1138 }
 0xf71   :  { %673 = vrot.lane.b32.xlu1 %v1139_v33, %s1264_s28  ;;  %v169_v33 = vrot.slane %v1340_v30, %v168_v23 }
 0xfe3   :  { %v674_v34 = vpop.permute.xlu1 %673 }
 0xfe4   :  { %v1409_v35 = vmul.f32 %v674_v34, %v658_v24  ;;  %v272_v24 = vrot.slane %v1354_v55, %v168_v23  ;;  %v375_v34 = vrot.slane %v1368_v18, %v168_v23 }
 0xfe6   :  { %v694_v36 = vpack.c.bf16 %v1409_v35, %v1409_v35  ;;  %v684_v26 = vrot.slane %v1409_v35, %v168_v23  ;;  %v581_v35 = vrot.slane %v1396_v8, %v168_v23 }
 0xfe8   :  { %700 = vrot.lane.b32.xlu0 %v694_v36, %s1268_s7 }
0x105a   :  { %v701_v37 = vpop.permute.xlu0 %700 }
0x105b   :  { %1062 = vmatmul.mubr.msk.bf16.vlgmr.msra.gmra.mxu0 %vm84_vm2, %v701_v37 }
0x111b   :  { %v751_v41 = vpop.f32.mrf.mxu0 }
0x111c   :  { %v757_v42 = vadd.f32 %v751_v41, %v693_v40 }
0x111d   :  { %v1063_v43 = vpop.f32.mrf.mxu0 }
0x111e   :  { %1140 = vtanh.f32 %v757_v42  ;;  %v758_v48 = vmul.f32 0.5, %v757_v42 }
0x111f   :  { %v754_v45 = vpop.f32.mrf.mxu0 }
0x1120   :  { %1142 = vtanh.f32 %v758_v48 }
0x1121   :  { %v1064_v46 = vpop.f32.mrf.mxu0 }
0x112b   :  { %v1141_v47 = vpop.eup %1140 }
0x112c   :  { %765 = vrot.lane.b32.xlu1 %v1141_v47, %s1264_s28 }
0x112d   :  { %v1143_v49 = vpop.eup %1142 }
0x112e   :  { %v760_v50 = vadd.f32 1.0, %v1143_v49 }
0x1130   :  { %v761_v51 = vmul.f32 0.5, %v760_v50 }
0x1132   :  { %v763_v54 = vmul.f32 %v761_v51, %v670_v29 }
0x119e   :  { %v766_v52 = vpop.permute.xlu1 %765 }
0x119f   :  { %v768_v53 = vmul.f32 %v766_v52, %v761_v51 }
0x11a1   :  { %770 = vrot.lane.b32.xlu0 %v768_v53, %s1268_s7 }
0x1213   :  { %v771_v56 = vpop.permute.xlu0 %770 }
0x1214   :  { %v773_v57 = vadd.f32 %v771_v56, %v763_v54 }
0x1216   :  { %1144 = vtanh.f32 %v773_v57 }
0x1223   :  { %v1145_v60 = vpop.eup %1144 }
0x1224   :  { %776 = vrot.lane.b32.xlu1 %v1145_v60, %s1264_s28 }
0x1296   :  { %v777_v61 = vpop.permute.xlu1 %776 }
0x1297   :  { %v779_v62 = vmul.f32 %v777_v61, %v761_v51 }
0x1299   :  { %v797_v63 = vpack.c.bf16 %v779_v62, %v779_v62  ;;  %v787_v36 = vrot.slane %v779_v62, %v168_v23 }
0x129b   :  { %803 = vrot.lane.b32.xlu0 %v797_v63, %s1268_s7 }
0x130d   :  { %v804_v1 = vpop.permute.xlu0 %803 }
0x130e   :  { %1070 = vmatmul.mubr.msk.bf16.vlgmr.msra.gmra.mxu1 %vm84_vm2, %v804_v1 }
0x13ce   :  { %v854_v5 = vpop.f32.mrf.mxu1 }
0x13cf   :  { %v860_v6 = vadd.f32 %v854_v5, %v796_v4 }
0x13d0   :  { %v1071_v9 = vpop.f32.mrf.mxu1 }
0x13d1   :  { %1146 = vtanh.f32 %v860_v6  ;;  %v861_v12 = vmul.f32 0.5, %v860_v6 }
0x13d2   :  { %v857_v0 = vpop.f32.mrf.mxu1 }
0x13d3   :  { %1148 = vtanh.f32 %v861_v12 }
0x13d4   :  { %v1072_v10 = vpop.f32.mrf.mxu1 }
0x13de   :  { %v1147_v11 = vpop.eup %1146 }
0x13df   :  { %868 = vrot.lane.b32.xlu1 %v1147_v11, %s1264_s28 }
0x13e0   :  { %v1149_v13 = vpop.eup %1148 }
0x13e1   :  { %v863_v17 = vadd.f32 1.0, %v1149_v13 }
0x13e3   :  { %v864_v21 = vmul.f32 0.5, %v863_v17 }
0x13e5   :  { %v866_v27 = vmul.f32 %v864_v21, %v773_v57 }
0x1451   :  { %v869_v7 = vpop.permute.xlu1 %868 }
0x1452   :  { %v871_v22 = vmul.f32 %v869_v7, %v864_v21 }
0x1454   :  { %873 = vrot.lane.b32.xlu0 %v871_v22, %s1268_s7 }
0x1458   :  { %273 = vrot.lane.b32.xlu0 %v272_v24, %s1268_s7 }
0x145c   :  { %479 = vrot.lane.b32.xlu0 %v478_v25, %s1268_s7 }
0x1460   :  { %685 = vrot.lane.b32.xlu0 %v684_v26, %s1268_s7 }
0x14c6   :  { %v874_v28 = vpop.permute.xlu0 %873 }
0x14c7   :  { %v876_v29 = vadd.f32 %v874_v28, %v866_v27 }
0x14c9   :  { %1150 = vtanh.f32 %v876_v29  ;;  %v904_v30 = vrot.slane %v876_v29, %v168_v23 }
0x14ca   :  { %v274_v31 = vpop.permute.xlu0 %273 }
0x14cb   :  { %277 = vst.msk [vmem:[#allocation9 + $0x2] sm:$0x3] %vm52_vm0, %v274_v31 }
0x14ce   :  { %v480_v32 = vpop.permute.xlu0 %479 }
0x14cf   :  { %483 = vst.msk [vmem:[#allocation9 + $0x6] sm:$0x3] %vm52_vm0, %v480_v32 }
0x14d2   :  { %v686_v55 = vpop.permute.xlu0 %685 }
0x14d3   :  { %689 = vst.msk [vmem:[#allocation9 + $0xa] sm:$0x3] %vm52_vm0, %v686_v55 }
0x14d6   :  { %v1151_v44 = vpop.eup %1150 }
0x14d7   :  { %879 = vrot.lane.b32.xlu1 %v1151_v44, %s1264_s28 }
0x14db   :  { %170 = vrot.lane.b32.xlu1 %v169_v33, %s1268_s7 }
0x14df   :  { %376 = vrot.lane.b32.xlu1 %v375_v34, %s1268_s7 }
0x14e3   :  { %582 = vrot.lane.b32.xlu1 %v581_v35, %s1268_s7 }
0x14e7   :  { %788 = vrot.lane.b32.xlu1 %v787_v36, %s1268_s7 }
0x1549   :  { %v880_v37 = vpop.permute.xlu1 %879 }
0x154a   :  { %v882_v38 = vmul.f32 %v880_v37, %v864_v21 }
0x154c   :  { %v890_v39 = vrot.slane %v882_v38, %v168_v23 }
0x154d   :  { %v171_v40 = vpop.permute.xlu1 %170 }
0x154e   :  { %174 = vst.msk [vmem:[#allocation9] sm:$0x3] %vm52_vm0, %v171_v40  ;;  %891 = vrot.lane.b32.xlu0 %v890_v39, %s1268_s7 }
0x1551   :  { %v377_v41 = vpop.permute.xlu1 %376 }
0x1552   :  { %380 = vst.msk [vmem:[#allocation9 + $0x4] sm:$0x3] %vm52_vm0, %v377_v41  ;;  %905 = vrot.lane.b32.xlu0 %v904_v30, %s1270_s1 }
0x1555   :  { %v583_v18 = vpop.permute.xlu1 %582 }
0x1556   :  { %586 = vst.msk [vmem:[#allocation9 + $0x8] sm:$0x3] %vm52_vm0, %v583_v18 }
0x1559   :  { %v789_v8 = vpop.permute.xlu1 %788 }
0x155a   :  { %792 = vst.msk [vmem:[#allocation9 + $0xc] sm:$0x3] %vm52_vm0, %v789_v8 }
0x15c0   :  { %v892_v42 = vpop.permute.xlu0 %891 }
0x15c1   :  { %895 = vst.msk [vmem:[#allocation9 + $0xe] sm:$0x3] %vm52_vm0, %v892_v42  ;;  %896 = vst.msk [vmem:[#allocation2] sm:$0x3] %vm52_vm0, %v892_v42 }
0x15c2   :  { %912 = vst.msk [vmem:[#allocation10] sm:$0x3] %vm52_vm0, %v892_v42 }
0x15c3   :  { %1203 = shalt.err (!%p1200_p0)
}
0x15c4   :  { %935 = dma.vmem_to_hbm [thread:$0]  %s933_s9, 32, %s1467_s4, [#allocation11]  }
0x15c5   :  { %s1212_s17 = scalar_lea.vmem %s920_s11, 256  ;;  %p1217_p2 = scmp.lt.s32.totalorder %s920_s11, %s920_s11 }
0x15c6   :  { %p1213_p1 = scmp.ne.s32.totalorder %s920_s11, %s1212_s17  ;;  %p1218_p3 = scmp.lt.s32.totalorder %s1212_s17, %s1212_s17 }
0x15c8   :  { %p1219_p4 = por %p1218_p3, %p1217_p2 }
0x15ca   :  { %p1220_p5 = pnand %p1219_p4, %p1213_p1 }
0x15cc   :  { %1223 = shalt.err (!%p1220_p5)
}
0x15cd   :  { %s1274_s18 = smov 2   ;;  %v906_v43 = vpop.permute.xlu0 %905  ;;  %s1232_s4 = scalar_lea.vmem %s943_s13, 32 }
0x15ce   :  { %925 = dma.vmem_to_hbm [thread:$0]  %s920_s11, 256, %s1466_s3, [#allocation6], %s1268_s7, %s1268_s7, %s1274_s18   ;;  %908 = vst.msk [vmem:[#allocation3] sm:$0x3] %vm52_vm0, %v906_v43  ;;  %913 = vst.msk [vmem:[#allocation12] sm:$0x3] %vm52_vm0, %v906_v43 }
0x15cf   :  { %p1233_p6 = scmp.ne.s32.totalorder %s943_s13, %s1232_s4  ;;  %p1237_p7 = scmp.lt.s32.totalorder %s943_s13, %s943_s13 }
0x15d0   :  { %p1238_p8 = scmp.lt.s32.totalorder %s1232_s4, %s1232_s4 }
0x15d2   :  { %p1239_p9 = por %p1238_p8, %p1237_p7 }
0x15d4   :  { %p1240_p10 = pnand %p1239_p9, %p1233_p6 }
0x15d6   :  { %1243 = shalt.err (!%p1240_p10)
}
0x15d7   :  { %945 = dma.vmem_to_hbm [thread:$0]  %s943_s13, 32, %s1468_s5, [#allocation11]  }
0x15d8   :  { %1256 = dma.done.wait [#allocation6], 256  }
0x15d9   :  { %1257 = vsyncadd [#allocation6], 4294967040 }
0x15da   :  { %1258 = dma.done.wait [#allocation11], 64  }
0x15db   :  { %1259 = vsyncadd [#allocation11], 4294967232 }
0x15dc   :  { %955 = vsyncpa [#allocation5], 1 }
0x15dd   :  { %956 = vsyncpa [#allocation8], 1 }
0x15de   :  { %957 = vsyncpa [#allocation6], 1 }
0x15df   :  { %958 = vsyncpa [#allocation11], 1 }

</bundles_post_ra>
